<compile_context>
chip_gen: v7x
topology: tpu7x:2x2x1
jax: 0.10.0
libtpu: 0.0.40
codegen_flags: <defaults>
</compile_context>

<pallas_src>
import functools

import jax
import jax.numpy as jnp
import numpy as np
from jax.experimental import pallas as pl
from jax.experimental.pallas import tpu as pltpu

IN_DIM = 32          # ReadoutLayer in_dim
HID = 16             # GAT_NET hidden
HEADS = 4            # gat1 heads
LEAKY = 0.2          # PyG GATConv leaky-relu negative slope
NEG = -1e9
GRAPHS_PER_STEP = 8  # graphs pooled per grid step


def _round_up(v, m):
    return ((v + m - 1) // m) * m


def _tile_budget():
    """Per-generation (TM, vmem_limit_bytes): big tiles on 128-MiB parts, tight on v7x."""
    cap = 0
    try:
        info = pltpu.get_tpu_info()
        cap = int(getattr(info, "vmem_capacity_bytes", 0) or 0)
    except Exception:
        cap = 0
    if cap >= 96 * 1024 * 1024:            # v5e / v6e: 128 MiB physical VMEM
        return 256, 80 * 1024 * 1024
    return 128, 28 * 1024 * 1024           # v7x (64 MiB, 2 TCs) or unknown: stay conservative


def _const_spec(shape, index_map, buffered):
    """BlockSpec for a grid-invariant block; Buffered(1) avoids pointless double-buffering."""
    if buffered and hasattr(pl, "Buffered"):
        try:
            return pl.BlockSpec(shape, index_map, pipeline_mode=pl.Buffered(1))
        except TypeError:
            pass
    return pl.BlockSpec(shape, index_map)


# --------------------------- kernel 1: gat1 attention + relu + gat2 feature transform ------------

def gat1_h2_kernel(negb_ref, h1h_ref, ssrc_ref, sdst_ref, b1_ref, w2t_ref, h2_ref):
    # Hoisted additive edge mask (precomputed in the wrapper, bf16); single cast, reused per head.
    neg = negb_ref[...].astype(jnp.float32)                               # [TM, N]

    # Per-head loop: only one [TM, N] score/prob tensor live at a time.
    outs = []
    for h in range(HEADS):
        e = sdst_ref[:, h:h + 1] + ssrc_ref[h:h + 1, :]                   # [TM, N]
        e = jnp.where(e > 0, e, LEAKY * e) + neg
        e = e - jnp.max(e, axis=-1, keepdims=True)
        p = jnp.exp(e)                                                    # [TM, N]
        # Deferred softmax normalization: normalize after the aggregation matmul (EUP recip).
        inv_den = pl.reciprocal(jnp.sum(p, axis=-1, keepdims=True), approx=True)   # [TM, 1]
        agg = jnp.dot(p.astype(jnp.bfloat16), h1h_ref[h],
                      preferred_element_type=jnp.float32)                 # bf16 MXU -> [TM, HID]
        outs.append(agg * inv_den)

    o1 = jnp.concatenate(outs, axis=-1) + b1_ref[...]                     # [TM, H*D]
    o1 = jnp.maximum(o1, 0.0)                                             # relu
    # TODO(synk): F.dropout between the GAT layers is training-only; inference no-op here.

    # gat2 feature transform (out_dim = 1), emitted lane-major as a [1, TM] row.
    h2_ref[...] = jax.lax.dot_general(w2t_ref[...], o1, (((1,), (1,)), ((), ())),
                                      preferred_element_type=jnp.float32)


# --------------------------- kernel 2: gat2 attention + sigmoid + emb + x_ -----------------------

def gat2_emb_kernel(xt_ref, negb_ref, h2row_ref, h2col_ref,
                    a2s_ref, a2d_ref, b2_ref, wemb_ref, bemb_ref, out_ref):
    neg = negb_ref[...].astype(jnp.float32)                               # [TM, N]
    h2_row = h2row_ref[...]                                               # [1, N] lane-major keys

    # Single-head, dim-1 attention: rank-1 scores stay on the VPU.
    s_src = h2_row * a2s_ref[...]                                         # [1, N]
    s_dst = h2col_ref[...] * a2d_ref[...]                                 # [TM, 1]
    e = s_dst + s_src                                                     # [TM, N]
    e = jnp.where(e > 0, e, LEAKY * e) + neg
    e = e - jnp.max(e, axis=-1, keepdims=True)
    p = jnp.exp(e)

    # Numerator and softmax denominator via VPU multiply + lane reduce (no matmul, no concat).
    num = jnp.sum(p * h2_row, axis=-1, keepdims=True)                     # [TM, 1]
    den = jnp.sum(p, axis=-1, keepdims=True)                              # [TM, 1]
    o2 = num * pl.reciprocal(den, approx=True) + b2_ref[...]              # [TM, 1]
    att = 1.0 / (1.0 + jnp.exp(-o2))                                      # exact-recip sigmoid

    # emb = relu(Linear(x)) fused here (no separate HBM round trip for emb).
    emb = jnp.dot(xt_ref[...], wemb_ref[...],
                  preferred_element_type=jnp.float32) + bemb_ref[...]
    emb = jnp.maximum(emb, 0.0)                                           # [TM, F]

    out_ref[...] = att * emb                                              # x_ = att_ * emb_


# --------------------------- kernel 3: masked max+mean pooling (aligned gathers) -----------------

def masked_pool_kernel(off_ref, len_ref, x_ref, o_ref, *, lwin, gb):
    g = pl.program_id(0)
    rows = []
    for j in range(gb):                                                   # gb graphs per step
        b = g * gb + j
        off = off_ref[b]
        ln = len_ref[b]
        base = pl.multiple_of((off // 8) * 8, 8)                          # 8-aligned sublane start
        shift = off - base
        seg = x_ref[pl.ds(base, lwin), :]                                 # [lwin, F] aligned window
        idx = jax.lax.broadcasted_iota(jnp.int32, (lwin, 1), 0)
        m = jnp.logical_and(idx >= shift, idx < shift + ln).astype(jnp.float32)
        xmax = jnp.max(seg + (m - 1.0) * 1e9, axis=0, keepdims=True)      # masked max   [1, F]
        xsum = jnp.sum(seg * m, axis=0, keepdims=True)                    # masked sum   [1, F]
        cnt = jnp.maximum(jnp.sum(m, axis=0, keepdims=True), 1.0)         # guard empty graphs
        rows.append(xmax + xsum / cnt)                                    # __max + __mean
    o_ref[...] = jnp.concatenate(rows, axis=0)                            # [gb, F]


# ----------------------------------------- wrapper -----------------------------------------------

def readout_layer(x, adj, lengths, params, use_buffered=True):
    N, F = x.shape
    B = len(lengths)
    Lmax = max(lengths)
    lwin = _round_up(Lmax, 8) + 8             # aligned gather window (+8 slack for base shift)

    tm_max, vmem_limit = _tile_budget()
    raw = N + lwin                            # pool windows pl.ds(base, lwin) must stay in bounds
    if raw <= tm_max:
        n_pad = _round_up(raw, 8)
        tm = n_pad
    else:
        tm = tm_max
        n_pad = _round_up(raw, tm)
    nt = n_pad // tm

    x_pad = jnp.zeros((n_pad, F), jnp.float32).at[:N, :].set(x)
    adj_pad = jnp.zeros((n_pad, n_pad), jnp.float32).at[:N, :N].set(adj)
    # Additive edge mask precomputed ONCE (bf16: exact 0, ~-1e9): deletes in-kernel where().
    negb = jnp.where(adj_pad > 0, 0.0, NEG).astype(jnp.bfloat16)

    # Tile-invariant precompute hoisted out of pass 1 (plain XLA, done once).
    h1_all = jnp.dot(x_pad, params["w1"])                                 # [n_pad, H*D]
    h1_r = h1_all.reshape(n_pad, HEADS, HID)
    s_src_all = jnp.einsum("nhd,hd->hn", h1_r, params["a1_src"])          # [H, n_pad]
    s_dst_all = jnp.einsum("nhd,hd->nh", h1_r, params["a1_dst"])          # [n_pad, H]
    h1_heads = jnp.transpose(h1_r, (1, 0, 2)).astype(jnp.bfloat16)        # [H, n_pad, HID] (keys)
    w2t = params["w2"].T                                                  # [1, H*D]

    cparams = pltpu.CompilerParams(dimension_semantics=("parallel",),
                                   vmem_limit_bytes=vmem_limit)
    cspec = functools.partial(_const_spec, buffered=use_buffered)

    # ---- pass 1: gat1 multi-head attention + relu + gat2 feature transform -> h2 [1, N_pad]
    h2_row = pl.pallas_call(
        gat1_h2_kernel,
        out_shape=jax.ShapeDtypeStruct((1, n_pad), jnp.float32),
        grid=(nt,),
        in_specs=[
            pl.BlockSpec((tm, n_pad), lambda i: (i, 0)),                  # neg-bias row tile (bf16)
            cspec((HEADS, n_pad, HID), lambda i: (0, 0, 0)),              # h1 keys per head (bf16)
            cspec((HEADS, n_pad), lambda i: (0, 0)),                      # s_src (all keys)
            pl.BlockSpec((tm, HEADS), lambda i: (i, 0)),                  # s_dst (query tile)
            cspec((1, HEADS * HID), lambda i: (0, 0)),                    # b1
            cspec((1, HEADS * HID), lambda i: (0, 0)),                    # w2^T
        ],
        out_specs=pl.BlockSpec((1, tm), lambda i: (0, i)),                # lane-major h2 row
        compiler_params=cparams,
    )(negb, h1_heads, s_src_all, s_dst_all, params["b1"], w2t)

    h2_col = h2_row.reshape(n_pad, 1)                                     # tiny XLA transpose

    # ---- pass 2: gat2 attention + bias + sigmoid, emb linear + relu, x_ = att * emb
    x_nodes_pad = pl.pallas_call(
        gat2_emb_kernel,
        out_shape=jax.ShapeDtypeStruct((n_pad, F), jnp.float32),
        grid=(nt,),
        in_specs=[
            pl.BlockSpec((tm, F), lambda i: (i, 0)),                      # x row tile (for emb)
            pl.BlockSpec((tm, n_pad), lambda i: (i, 0)),                  # neg-bias row tile (bf16)
            cspec((1, n_pad), lambda i: (0, 0)),                          # h2 keys (lane-major row)
            pl.BlockSpec((tm, 1), lambda i: (i, 0)),                      # h2 query tile (column)
            cspec((1, 1), lambda i: (0, 0)),                              # a2_src
            cspec((1, 1), lambda i: (0, 0)),                              # a2_dst
            cspec((1, 1), lambda i: (0, 0)),                              # b2
            cspec((F, F), lambda i: (0, 0)),                              # w_emb
            cspec((1, F), lambda i: (0, 0)),                              # b_emb
        ],
        out_specs=pl.BlockSpec((tm, F), lambda i: (i, 0)),
        compiler_params=cparams,
    )(x_pad, negb, h2_row, h2_col, params["a2_src"], params["a2_dst"], params["b2"],
      params["w_emb"], params["b_emb"])

    # ---- pass 3: masked max + mean pooling, gathering rows straight from x_ (no graph2batch)
    b_pad = _round_up(B, GRAPHS_PER_STEP)
    off_np = np.zeros((b_pad,), np.int32)
    len_np = np.zeros((b_pad,), np.int32)
    off_np[:B] = np.concatenate([[0], np.cumsum(lengths)[:-1]]).astype(np.int32)
    len_np[:B] = np.asarray(lengths, np.int32)

    pooled_pad = pl.pallas_call(
        functools.partial(masked_pool_kernel, lwin=lwin, gb=GRAPHS_PER_STEP),
        out_shape=jax.ShapeDtypeStruct((b_pad, F), jnp.float32),
        grid_spec=pltpu.PrefetchScalarGridSpec(
            num_scalar_prefetch=2,
            grid=(b_pad // GRAPHS_PER_STEP,),
            in_specs=[cspec((n_pad, F), lambda g, off, ln: (0, 0))],
            out_specs=pl.BlockSpec((GRAPHS_PER_STEP, F), lambda g, off, ln: (g, 0)),
        ),
        compiler_params=cparams,
    )(jnp.asarray(off_np), jnp.asarray(len_np), x_nodes_pad)

    return pooled_pad[:B], x_nodes_pad[:N]


# ----------------------------------------- test glue ---------------------------------------------

def build_adj(lengths):
    """Dense adjacency: undirected chain inside each graph + self loops."""
    n = sum(lengths)
    adj = np.zeros((n, n), np.float32)
    off = 0
    for l in lengths:
        for i in range(l):
            adj[off + i, off + i] = 1.0
            if i + 1 < l:
                adj[off + i, off + i + 1] = 1.0
                adj[off + i + 1, off + i] = 1.0
        off += l
    return jnp.asarray(adj)


def glorot(key, shape):
    fan_in, fan_out = shape[0], shape[1]
    limit = (6.0 / (fan_in + fan_out)) ** 0.5
    return jax.random.uniform(key, shape, jnp.float32, -limit, limit)


if __name__ == "__main__":
    lengths = [5, 3]                     # two graphs, 5 and 3 nodes
    N = sum(lengths)
    B = len(lengths)

    keys = jax.random.split(jax.random.PRNGKey(0), 8)
    params = {
        # gat1: GATConv(IN_DIM, HID, heads=HEADS)
        "w1":     glorot(keys[0], (IN_DIM, HEADS * HID)),
        "a1_src": glorot(keys[1], (HEADS, HID)),
        "a1_dst": glorot(keys[2], (HEADS, HID)),
        "b1":     jnp.zeros((1, HEADS * HID), jnp.float32),
        # gat2: GATConv(HEADS*HID, 1)
        "w2":     glorot(keys[3], (HEADS * HID, 1)),
        "a2_src": glorot(keys[4], (1, 1)),
        "a2_dst": glorot(keys[5], (1, 1)),
        "b2":     jnp.zeros((1, 1), jnp.float32),
        # emb: Linear(IN_DIM, IN_DIM) -- xavier_uniform weight, zero bias
        "w_emb":  glorot(keys[6], (IN_DIM, IN_DIM)),
        "b_emb":  jnp.zeros((1, IN_DIM), jnp.float32),
    }

    x = jax.random.normal(keys[7], (N, IN_DIM), jnp.float32)
    adj = build_adj(lengths)

    try:
        x_out, x_nodes = readout_layer(x, adj, lengths, params, use_buffered=True)
        jax.block_until_ready((x_out, x_nodes))
    except Exception:
        # Fallback for jax versions without BlockSpec pipeline_mode / pl.Buffered lowering.
        x_out, x_nodes = readout_layer(x, adj, lengths, params, use_buffered=False)
        jax.block_until_ready((x_out, x_nodes))

    assert x_out.shape == (B, IN_DIM) and x_nodes.shape == (N, IN_DIM)
    assert bool(jnp.all(jnp.isfinite(x_out))) and bool(jnp.all(jnp.isfinite(x_nodes)))
    print("KERNEL_OK")
</pallas_src>

<mosaic_0001>
module attributes {stable_mosaic.version = 11 : i64} {
  func.func @gat1_h2_kernel(%arg0: i32, %arg1: memref<24x24xbf16, #tpu.memory_space<vmem>>, %arg2: memref<4x24x16xbf16, #tpu.memory_space<vmem>>, %arg3: memref<4x24xf32, #tpu.memory_space<vmem>>, %arg4: memref<24x4xf32, #tpu.memory_space<vmem>>, %arg5: memref<1x64xf32, #tpu.memory_space<vmem>>, %arg6: memref<1x64xf32, #tpu.memory_space<vmem>>, %arg7: memref<1x24xf32, #tpu.memory_space<vmem>>) attributes {dimension_semantics = [#tpu.dimension_semantics<parallel>], iteration_bounds = array<i64: 1>, scalar_prefetch = 0 : i64, scratch_operands = 0 : i64, tpu.core_type = #tpu.core_type<tc>, window_params = [{transform_indices = @transform_0, window_bounds = array<i64: 24, 24>}, {pipeline_mode = #tpu.pipeline_mode<synchronous>, transform_indices = @transform_1, window_bounds = array<i64: 4, 24, 16>}, {pipeline_mode = #tpu.pipeline_mode<synchronous>, transform_indices = @transform_2, window_bounds = array<i64: 4, 24>}, {transform_indices = @transform_3, window_bounds = array<i64: 24, 4>}, {pipeline_mode = #tpu.pipeline_mode<synchronous>, transform_indices = @transform_4, window_bounds = array<i64: 1, 64>}, {pipeline_mode = #tpu.pipeline_mode<synchronous>, transform_indices = @transform_5, window_bounds = array<i64: 1, 64>}, {transform_indices = @transform_6, window_bounds = array<i64: 1, 24>}]} {
    %c0 = arith.constant 0 : index
    %c0_0 = arith.constant 0 : index
    %0 = vector.load %arg1[%c0, %c0_0] : memref<24x24xbf16, #tpu.memory_space<vmem>>, vector<24x24xbf16>
    %1 = arith.extf %0 : vector<24x24xbf16> to vector<24x24xf32>
    %c0_1 = arith.constant 0 : index
    %c0_2 = arith.constant 0 : index
    %2 = vector.load %arg4[%c0_1, %c0_2] : memref<24x4xf32, #tpu.memory_space<vmem>>, vector<24x1xf32>
    %c0_3 = arith.constant 0 : index
    %c0_4 = arith.constant 0 : index
    %3 = vector.load %arg3[%c0_3, %c0_4] : memref<4x24xf32, #tpu.memory_space<vmem>>, vector<1x24xf32>
    %4 = vector.broadcast %2 : vector<24x1xf32> to vector<24x24xf32>
    %5 = vector.broadcast %3 : vector<1x24xf32> to vector<24x24xf32>
    %6 = arith.addf %4, %5 : vector<24x24xf32>
    %cst = arith.constant 0.000000e+00 : f32
    %7 = vector.broadcast %cst : f32 to vector<24x24xf32>
    %8 = arith.cmpf ogt, %6, %7 : vector<24x24xf32>
    %cst_5 = arith.constant 2.000000e-01 : f32
    %9 = vector.broadcast %cst_5 : f32 to vector<24x24xf32>
    %10 = arith.mulf %9, %6 : vector<24x24xf32>
    %11 = arith.select %8, %6, %10 : vector<24x24xi1>, vector<24x24xf32>
    %12 = arith.addf %11, %1 : vector<24x24xf32>
    %cst_6 = arith.constant dense<0xFF800000> : vector<24xf32>
    %13 = vector.multi_reduction <maximumf>, %12, %cst_6 [1] : vector<24x24xf32> to vector<24xf32>
    %14 = vector.shape_cast %13 : vector<24xf32> to vector<24x1xf32>
    %15 = vector.broadcast %14 : vector<24x1xf32> to vector<24x24xf32>
    %16 = arith.subf %12, %15 : vector<24x24xf32>
    %17 = math.exp %16 : vector<24x24xf32>
    %cst_7 = arith.constant dense<0.000000e+00> : vector<24xf32>
    %18 = vector.multi_reduction <add>, %17, %cst_7 [1] : vector<24x24xf32> to vector<24xf32>
    %19 = vector.shape_cast %18 : vector<24xf32> to vector<24x1xf32>
    %20 = tpu.reciprocal %19 {approx = true} : vector<24x1xf32> -> vector<24x1xf32>
    %21 = arith.truncf %17 : vector<24x24xf32> to vector<24x24xbf16>
    %c0_8 = arith.constant 0 : index
    %c0_9 = arith.constant 0 : index
    %c0_10 = arith.constant 0 : index
    %22 = vector.load %arg2[%c0_8, %c0_9, %c0_10] : memref<4x24x16xbf16, #tpu.memory_space<vmem>>, vector<1x24x16xbf16>
    %23 = vector.shape_cast %22 : vector<1x24x16xbf16> to vector<24x16xbf16>
    %cst_11 = arith.constant dense<0.000000e+00> : vector<24x16xf32>
    %24 = tpu.matmul %21, %23, %cst_11 {dimension_numbers = #tpu.dot_dimension_numbers<[1], [0], [0], [1], [0, 0, 1, 1], [], []>} : vector<24x24xbf16>, vector<24x16xbf16>, vector<24x16xf32> -> vector<24x16xf32>
    %25 = vector.broadcast %20 : vector<24x1xf32> to vector<24x16xf32>
    %26 = arith.mulf %24, %25 : vector<24x16xf32>
    %c0_12 = arith.constant 0 : index
    %c1 = arith.constant 1 : index
    %27 = vector.load %arg4[%c0_12, %c1] : memref<24x4xf32, #tpu.memory_space<vmem>>, vector<24x1xf32>
    %c1_13 = arith.constant 1 : index
    %c0_14 = arith.constant 0 : index
    %28 = vector.load %arg3[%c1_13, %c0_14] : memref<4x24xf32, #tpu.memory_space<vmem>>, vector<1x24xf32>
    %29 = vector.broadcast %27 : vector<24x1xf32> to vector<24x24xf32>
    %30 = vector.broadcast %28 : vector<1x24xf32> to vector<24x24xf32>
    %31 = arith.addf %29, %30 : vector<24x24xf32>
    %cst_15 = arith.constant 0.000000e+00 : f32
    %32 = vector.broadcast %cst_15 : f32 to vector<24x24xf32>
    %33 = arith.cmpf ogt, %31, %32 : vector<24x24xf32>
    %cst_16 = arith.constant 2.000000e-01 : f32
    %34 = vector.broadcast %cst_16 : f32 to vector<24x24xf32>
    %35 = arith.mulf %34, %31 : vector<24x24xf32>
    %36 = arith.select %33, %31, %35 : vector<24x24xi1>, vector<24x24xf32>
    %37 = arith.addf %36, %1 : vector<24x24xf32>
    %cst_17 = arith.constant dense<0xFF800000> : vector<24xf32>
    %38 = vector.multi_reduction <maximumf>, %37, %cst_17 [1] : vector<24x24xf32> to vector<24xf32>
    %39 = vector.shape_cast %38 : vector<24xf32> to vector<24x1xf32>
    %40 = vector.broadcast %39 : vector<24x1xf32> to vector<24x24xf32>
    %41 = arith.subf %37, %40 : vector<24x24xf32>
    %42 = math.exp %41 : vector<24x24xf32>
    %cst_18 = arith.constant dense<0.000000e+00> : vector<24xf32>
    %43 = vector.multi_reduction <add>, %42, %cst_18 [1] : vector<24x24xf32> to vector<24xf32>
    %44 = vector.shape_cast %43 : vector<24xf32> to vector<24x1xf32>
    %45 = tpu.reciprocal %44 {approx = true} : vector<24x1xf32> -> vector<24x1xf32>
    %46 = arith.truncf %42 : vector<24x24xf32> to vector<24x24xbf16>
    %c1_19 = arith.constant 1 : index
    %c0_20 = arith.constant 0 : index
    %c0_21 = arith.constant 0 : index
    %47 = vector.load %arg2[%c1_19, %c0_20, %c0_21] : memref<4x24x16xbf16, #tpu.memory_space<vmem>>, vector<1x24x16xbf16>
    %48 = vector.shape_cast %47 : vector<1x24x16xbf16> to vector<24x16xbf16>
    %cst_22 = arith.constant dense<0.000000e+00> : vector<24x16xf32>
    %49 = tpu.matmul %46, %48, %cst_22 {dimension_numbers = #tpu.dot_dimension_numbers<[1], [0], [0], [1], [0, 0, 1, 1], [], []>} : vector<24x24xbf16>, vector<24x16xbf16>, vector<24x16xf32> -> vector<24x16xf32>
    %50 = vector.broadcast %45 : vector<24x1xf32> to vector<24x16xf32>
    %51 = arith.mulf %49, %50 : vector<24x16xf32>
    %c0_23 = arith.constant 0 : index
    %c2 = arith.constant 2 : index
    %52 = vector.load %arg4[%c0_23, %c2] : memref<24x4xf32, #tpu.memory_space<vmem>>, vector<24x1xf32>
    %c2_24 = arith.constant 2 : index
    %c0_25 = arith.constant 0 : index
    %53 = vector.load %arg3[%c2_24, %c0_25] : memref<4x24xf32, #tpu.memory_space<vmem>>, vector<1x24xf32>
    %54 = vector.broadcast %52 : vector<24x1xf32> to vector<24x24xf32>
    %55 = vector.broadcast %53 : vector<1x24xf32> to vector<24x24xf32>
    %56 = arith.addf %54, %55 : vector<24x24xf32>
    %cst_26 = arith.constant 0.000000e+00 : f32
    %57 = vector.broadcast %cst_26 : f32 to vector<24x24xf32>
    %58 = arith.cmpf ogt, %56, %57 : vector<24x24xf32>
    %cst_27 = arith.constant 2.000000e-01 : f32
    %59 = vector.broadcast %cst_27 : f32 to vector<24x24xf32>
    %60 = arith.mulf %59, %56 : vector<24x24xf32>
    %61 = arith.select %58, %56, %60 : vector<24x24xi1>, vector<24x24xf32>
    %62 = arith.addf %61, %1 : vector<24x24xf32>
    %cst_28 = arith.constant dense<0xFF800000> : vector<24xf32>
    %63 = vector.multi_reduction <maximumf>, %62, %cst_28 [1] : vector<24x24xf32> to vector<24xf32>
    %64 = vector.shape_cast %63 : vector<24xf32> to vector<24x1xf32>
    %65 = vector.broadcast %64 : vector<24x1xf32> to vector<24x24xf32>
    %66 = arith.subf %62, %65 : vector<24x24xf32>
    %67 = math.exp %66 : vector<24x24xf32>
    %cst_29 = arith.constant dense<0.000000e+00> : vector<24xf32>
    %68 = vector.multi_reduction <add>, %67, %cst_29 [1] : vector<24x24xf32> to vector<24xf32>
    %69 = vector.shape_cast %68 : vector<24xf32> to vector<24x1xf32>
    %70 = tpu.reciprocal %69 {approx = true} : vector<24x1xf32> -> vector<24x1xf32>
    %71 = arith.truncf %67 : vector<24x24xf32> to vector<24x24xbf16>
    %c2_30 = arith.constant 2 : index
    %c0_31 = arith.constant 0 : index
    %c0_32 = arith.constant 0 : index
    %72 = vector.load %arg2[%c2_30, %c0_31, %c0_32] : memref<4x24x16xbf16, #tpu.memory_space<vmem>>, vector<1x24x16xbf16>
    %73 = vector.shape_cast %72 : vector<1x24x16xbf16> to vector<24x16xbf16>
    %cst_33 = arith.constant dense<0.000000e+00> : vector<24x16xf32>
    %74 = tpu.matmul %71, %73, %cst_33 {dimension_numbers = #tpu.dot_dimension_numbers<[1], [0], [0], [1], [0, 0, 1, 1], [], []>} : vector<24x24xbf16>, vector<24x16xbf16>, vector<24x16xf32> -> vector<24x16xf32>
    %75 = vector.broadcast %70 : vector<24x1xf32> to vector<24x16xf32>
    %76 = arith.mulf %74, %75 : vector<24x16xf32>
    %c0_34 = arith.constant 0 : index
    %c3 = arith.constant 3 : index
    %77 = vector.load %arg4[%c0_34, %c3] : memref<24x4xf32, #tpu.memory_space<vmem>>, vector<24x1xf32>
    %c3_35 = arith.constant 3 : index
    %c0_36 = arith.constant 0 : index
    %78 = vector.load %arg3[%c3_35, %c0_36] : memref<4x24xf32, #tpu.memory_space<vmem>>, vector<1x24xf32>
    %79 = vector.broadcast %77 : vector<24x1xf32> to vector<24x24xf32>
    %80 = vector.broadcast %78 : vector<1x24xf32> to vector<24x24xf32>
    %81 = arith.addf %79, %80 : vector<24x24xf32>
    %cst_37 = arith.constant 0.000000e+00 : f32
    %82 = vector.broadcast %cst_37 : f32 to vector<24x24xf32>
    %83 = arith.cmpf ogt, %81, %82 : vector<24x24xf32>
    %cst_38 = arith.constant 2.000000e-01 : f32
    %84 = vector.broadcast %cst_38 : f32 to vector<24x24xf32>
    %85 = arith.mulf %84, %81 : vector<24x24xf32>
    %86 = arith.select %83, %81, %85 : vector<24x24xi1>, vector<24x24xf32>
    %87 = arith.addf %86, %1 : vector<24x24xf32>
    %cst_39 = arith.constant dense<0xFF800000> : vector<24xf32>
    %88 = vector.multi_reduction <maximumf>, %87, %cst_39 [1] : vector<24x24xf32> to vector<24xf32>
    %89 = vector.shape_cast %88 : vector<24xf32> to vector<24x1xf32>
    %90 = vector.broadcast %89 : vector<24x1xf32> to vector<24x24xf32>
    %91 = arith.subf %87, %90 : vector<24x24xf32>
    %92 = math.exp %91 : vector<24x24xf32>
    %cst_40 = arith.constant dense<0.000000e+00> : vector<24xf32>
    %93 = vector.multi_reduction <add>, %92, %cst_40 [1] : vector<24x24xf32> to vector<24xf32>
    %94 = vector.shape_cast %93 : vector<24xf32> to vector<24x1xf32>
    %95 = tpu.reciprocal %94 {approx = true} : vector<24x1xf32> -> vector<24x1xf32>
    %96 = arith.truncf %92 : vector<24x24xf32> to vector<24x24xbf16>
    %c3_41 = arith.constant 3 : index
    %c0_42 = arith.constant 0 : index
    %c0_43 = arith.constant 0 : index
    %97 = vector.load %arg2[%c3_41, %c0_42, %c0_43] : memref<4x24x16xbf16, #tpu.memory_space<vmem>>, vector<1x24x16xbf16>
    %98 = vector.shape_cast %97 : vector<1x24x16xbf16> to vector<24x16xbf16>
    %cst_44 = arith.constant dense<0.000000e+00> : vector<24x16xf32>
    %99 = tpu.matmul %96, %98, %cst_44 {dimension_numbers = #tpu.dot_dimension_numbers<[1], [0], [0], [1], [0, 0, 1, 1], [], []>} : vector<24x24xbf16>, vector<24x16xbf16>, vector<24x16xf32> -> vector<24x16xf32>
    %100 = vector.broadcast %95 : vector<24x1xf32> to vector<24x16xf32>
    %101 = arith.mulf %99, %100 : vector<24x16xf32>
    %102 = tpu.concatenate %26, %51, %76, %101 in 1 : vector<24x16xf32>, vector<24x16xf32>, vector<24x16xf32>, vector<24x16xf32> -> vector<24x64xf32>
    %c0_45 = arith.constant 0 : index
    %c0_46 = arith.constant 0 : index
    %103 = vector.load %arg5[%c0_45, %c0_46] : memref<1x64xf32, #tpu.memory_space<vmem>>, vector<1x64xf32>
    %104 = vector.broadcast %103 : vector<1x64xf32> to vector<24x64xf32>
    %105 = arith.addf %102, %104 : vector<24x64xf32>
    %cst_47 = arith.constant 0.000000e+00 : f32
    %106 = vector.broadcast %cst_47 : f32 to vector<24x64xf32>
    %107 = arith.maximumf %105, %106 : vector<24x64xf32>
    %c0_48 = arith.constant 0 : index
    %c0_49 = arith.constant 0 : index
    %108 = vector.load %arg6[%c0_48, %c0_49] : memref<1x64xf32, #tpu.memory_space<vmem>>, vector<1x64xf32>
    %cst_50 = arith.constant dense<0.000000e+00> : vector<1x24xf32>
    %109 = tpu.matmul %108, %107, %cst_50 {dimension_numbers = #tpu.dot_dimension_numbers<[1], [1], [0], [0], [0, 0, 1, 0], [], []>} : vector<1x64xf32>, vector<24x64xf32>, vector<1x24xf32> -> vector<1x24xf32>
    %c0_51 = arith.constant 0 : index
    %c0_52 = arith.constant 0 : index
    %110 = vector.load %arg7[%c0_51, %c0_52] : memref<1x24xf32, #tpu.memory_space<vmem>>, vector<1x24xf32>
    tpu.vector_store %arg7[%c0_51, %c0_52], %109 {strides = array<i32>} : memref<1x24xf32, #tpu.memory_space<vmem>>, vector<1x24xf32>,
    return
  }
  func.func @transform_0(%arg0: i32) -> (i32, i32) {
    %c0_i32 = arith.constant 0 : i32
    %c0_i32_0 = arith.constant 0 : i32
    return %arg0, %c0_i32 : i32, i32
  }
  func.func @transform_1(%arg0: i32) -> (i32, i32, i32) {
    %c0_i32 = arith.constant 0 : i32
    %c0_i32_0 = arith.constant 0 : i32
    %c0_i32_1 = arith.constant 0 : i32
    %c0_i32_2 = arith.constant 0 : i32
    return %c0_i32, %c0_i32_0, %c0_i32_1 : i32, i32, i32
  }
  func.func @transform_2(%arg0: i32) -> (i32, i32) {
    %c0_i32 = arith.constant 0 : i32
    %c0_i32_0 = arith.constant 0 : i32
    %c0_i32_1 = arith.constant 0 : i32
    return %c0_i32, %c0_i32_0 : i32, i32
  }
  func.func @transform_3(%arg0: i32) -> (i32, i32) {
    %c0_i32 = arith.constant 0 : i32
    %c0_i32_0 = arith.constant 0 : i32
    return %arg0, %c0_i32 : i32, i32
  }
  func.func @transform_4(%arg0: i32) -> (i32, i32) {
    %c0_i32 = arith.constant 0 : i32
    %c0_i32_0 = arith.constant 0 : i32
    %c0_i32_1 = arith.constant 0 : i32
    return %c0_i32, %c0_i32_0 : i32, i32
  }
  func.func @transform_5(%arg0: i32) -> (i32, i32) {
    %c0_i32 = arith.constant 0 : i32
    %c0_i32_0 = arith.constant 0 : i32
    %c0_i32_1 = arith.constant 0 : i32
    return %c0_i32, %c0_i32_0 : i32, i32
  }
  func.func @transform_6(%arg0: i32) -> (i32, i32) {
    %c0_i32 = arith.constant 0 : i32
    %c0_i32_0 = arith.constant 0 : i32
    return %c0_i32, %arg0 : i32, i32
  }
}

module attributes {stable_mosaic.version = 11 : i64} {
  func.func @gat1_h2_kernel(%arg0: i32, %arg1: memref<24x24xbf16, #tpu.memory_space<vmem>>, %arg2: memref<4x24x16xbf16, #tpu.memory_space<vmem>>, %arg3: memref<4x24xf32, #tpu.memory_space<vmem>>, %arg4: memref<24x4xf32, #tpu.memory_space<vmem>>, %arg5: memref<1x64xf32, #tpu.memory_space<vmem>>, %arg6: memref<1x64xf32, #tpu.memory_space<vmem>>, %arg7: memref<1x24xf32, #tpu.memory_space<vmem>>) attributes {dimension_semantics = [#tpu.dimension_semantics<parallel>], iteration_bounds = array<i64: 1>, scalar_prefetch = 0 : i64, scratch_operands = 0 : i64, tpu.core_type = #tpu.core_type<tc>, window_params = [{transform_indices = @transform_0, window_bounds = array<i64: 24, 24>}, {pipeline_mode = #tpu.pipeline_mode<synchronous>, transform_indices = @transform_1, window_bounds = array<i64: 4, 24, 16>}, {pipeline_mode = #tpu.pipeline_mode<synchronous>, transform_indices = @transform_2, window_bounds = array<i64: 4, 24>}, {transform_indices = @transform_3, window_bounds = array<i64: 24, 4>}, {pipeline_mode = #tpu.pipeline_mode<synchronous>, transform_indices = @transform_4, window_bounds = array<i64: 1, 64>}, {pipeline_mode = #tpu.pipeline_mode<synchronous>, transform_indices = @transform_5, window_bounds = array<i64: 1, 64>}, {transform_indices = @transform_6, window_bounds = array<i64: 1, 24>}]} {
    %c0 = arith.constant 0 : index
    %c0_0 = arith.constant 0 : index
    %0 = vector.load %arg1[%c0, %c0_0] : memref<24x24xbf16, #tpu.memory_space<vmem>>, vector<24x24xbf16>
    %1 = arith.extf %0 : vector<24x24xbf16> to vector<24x24xf32>
    %c0_1 = arith.constant 0 : index
    %c0_2 = arith.constant 0 : index
    %2 = vector.load %arg4[%c0_1, %c0_2] : memref<24x4xf32, #tpu.memory_space<vmem>>, vector<24x1xf32>
    %c0_3 = arith.constant 0 : index
    %c0_4 = arith.constant 0 : index
    %3 = vector.load %arg3[%c0_3, %c0_4] : memref<4x24xf32, #tpu.memory_space<vmem>>, vector<1x24xf32>
    %4 = vector.broadcast %2 : vector<24x1xf32> to vector<24x24xf32>
    %5 = vector.broadcast %3 : vector<1x24xf32> to vector<24x24xf32>
    %6 = arith.addf %4, %5 : vector<24x24xf32>
    %cst = arith.constant 0.000000e+00 : f32
    %7 = vector.broadcast %cst : f32 to vector<24x24xf32>
    %8 = arith.cmpf ogt, %6, %7 : vector<24x24xf32>
    %cst_5 = arith.constant 2.000000e-01 : f32
    %9 = vector.broadcast %cst_5 : f32 to vector<24x24xf32>
    %10 = arith.mulf %9, %6 : vector<24x24xf32>
    %11 = arith.select %8, %6, %10 : vector<24x24xi1>, vector<24x24xf32>
    %12 = arith.addf %11, %1 : vector<24x24xf32>
    %cst_6 = arith.constant dense<0xFF800000> : vector<24xf32>
    %13 = vector.multi_reduction <maximumf>, %12, %cst_6 [1] : vector<24x24xf32> to vector<24xf32>
    %14 = vector.shape_cast %13 : vector<24xf32> to vector<24x1xf32>
    %15 = vector.broadcast %14 : vector<24x1xf32> to vector<24x24xf32>
    %16 = arith.subf %12, %15 : vector<24x24xf32>
    %17 = math.exp %16 : vector<24x24xf32>
    %cst_7 = arith.constant dense<0.000000e+00> : vector<24xf32>
    %18 = vector.multi_reduction <add>, %17, %cst_7 [1] : vector<24x24xf32> to vector<24xf32>
    %19 = vector.shape_cast %18 : vector<24xf32> to vector<24x1xf32>
    %20 = tpu.reciprocal %19 {approx = true} : vector<24x1xf32> -> vector<24x1xf32>
    %21 = arith.truncf %17 : vector<24x24xf32> to vector<24x24xbf16>
    %c0_8 = arith.constant 0 : index
    %c0_9 = arith.constant 0 : index
    %c0_10 = arith.constant 0 : index
    %22 = vector.load %arg2[%c0_8, %c0_9, %c0_10] : memref<4x24x16xbf16, #tpu.memory_space<vmem>>, vector<1x24x16xbf16>
    %23 = vector.shape_cast %22 : vector<1x24x16xbf16> to vector<24x16xbf16>
    %cst_11 = arith.constant dense<0.000000e+00> : vector<24x16xf32>
    %24 = tpu.matmul %21, %23, %cst_11 {dimension_numbers = #tpu.dot_dimension_numbers<[1], [0], [0], [1], [0, 0, 1, 1], [], []>} : vector<24x24xbf16>, vector<24x16xbf16>, vector<24x16xf32> -> vector<24x16xf32>
    %25 = vector.broadcast %20 : vector<24x1xf32> to vector<24x16xf32>
    %26 = arith.mulf %24, %25 : vector<24x16xf32>
    %c0_12 = arith.constant 0 : index
    %c1 = arith.constant 1 : index
    %27 = vector.load %arg4[%c0_12, %c1] : memref<24x4xf32, #tpu.memory_space<vmem>>, vector<24x1xf32>
    %c1_13 = arith.constant 1 : index
    %c0_14 = arith.constant 0 : index
    %28 = vector.load %arg3[%c1_13, %c0_14] : memref<4x24xf32, #tpu.memory_space<vmem>>, vector<1x24xf32>
    %29 = vector.broadcast %27 : vector<24x1xf32> to vector<24x24xf32>
    %30 = vector.broadcast %28 : vector<1x24xf32> to vector<24x24xf32>
    %31 = arith.addf %29, %30 : vector<24x24xf32>
    %cst_15 = arith.constant 0.000000e+00 : f32
    %32 = vector.broadcast %cst_15 : f32 to vector<24x24xf32>
    %33 = arith.cmpf ogt, %31, %32 : vector<24x24xf32>
    %cst_16 = arith.constant 2.000000e-01 : f32
    %34 = vector.broadcast %cst_16 : f32 to vector<24x24xf32>
    %35 = arith.mulf %34, %31 : vector<24x24xf32>
    %36 = arith.select %33, %31, %35 : vector<24x24xi1>, vector<24x24xf32>
    %37 = arith.addf %36, %1 : vector<24x24xf32>
    %cst_17 = arith.constant dense<0xFF800000> : vector<24xf32>
    %38 = vector.multi_reduction <maximumf>, %37, %cst_17 [1] : vector<24x24xf32> to vector<24xf32>
    %39 = vector.shape_cast %38 : vector<24xf32> to vector<24x1xf32>
    %40 = vector.broadcast %39 : vector<24x1xf32> to vector<24x24xf32>
    %41 = arith.subf %37, %40 : vector<24x24xf32>
    %42 = math.exp %41 : vector<24x24xf32>
    %cst_18 = arith.constant dense<0.000000e+00> : vector<24xf32>
    %43 = vector.multi_reduction <add>, %42, %cst_18 [1] : vector<24x24xf32> to vector<24xf32>
    %44 = vector.shape_cast %43 : vector<24xf32> to vector<24x1xf32>
    %45 = tpu.reciprocal %44 {approx = true} : vector<24x1xf32> -> vector<24x1xf32>
    %46 = arith.truncf %42 : vector<24x24xf32> to vector<24x24xbf16>
    %c1_19 = arith.constant 1 : index
    %c0_20 = arith.constant 0 : index
    %c0_21 = arith.constant 0 : index
    %47 = vector.load %arg2[%c1_19, %c0_20, %c0_21] : memref<4x24x16xbf16, #tpu.memory_space<vmem>>, vector<1x24x16xbf16>
    %48 = vector.shape_cast %47 : vector<1x24x16xbf16> to vector<24x16xbf16>
    %cst_22 = arith.constant dense<0.000000e+00> : vector<24x16xf32>
    %49 = tpu.matmul %46, %48, %cst_22 {dimension_numbers = #tpu.dot_dimension_numbers<[1], [0], [0], [1], [0, 0, 1, 1], [], []>} : vector<24x24xbf16>, vector<24x16xbf16>, vector<24x16xf32> -> vector<24x16xf32>
    %50 = vector.broadcast %45 : vector<24x1xf32> to vector<24x16xf32>
    %51 = arith.mulf %49, %50 : vector<24x16xf32>
    %c0_23 = arith.constant 0 : index
    %c2 = arith.constant 2 : index
    %52 = vector.load %arg4[%c0_23, %c2] : memref<24x4xf32, #tpu.memory_space<vmem>>, vector<24x1xf32>
    %c2_24 = arith.constant 2 : index
    %c0_25 = arith.constant 0 : index
    %53 = vector.load %arg3[%c2_24, %c0_25] : memref<4x24xf32, #tpu.memory_space<vmem>>, vector<1x24xf32>
    %54 = vector.broadcast %52 : vector<24x1xf32> to vector<24x24xf32>
    %55 = vector.broadcast %53 : vector<1x24xf32> to vector<24x24xf32>
    %56 = arith.addf %54, %55 : vector<24x24xf32>
    %cst_26 = arith.constant 0.000000e+00 : f32
    %57 = vector.broadcast %cst_26 : f32 to vector<24x24xf32>
    %58 = arith.cmpf ogt, %56, %57 : vector<24x24xf32>
    %cst_27 = arith.constant 2.000000e-01 : f32
    %59 = vector.broadcast %cst_27 : f32 to vector<24x24xf32>
    %60 = arith.mulf %59, %56 : vector<24x24xf32>
    %61 = arith.select %58, %56, %60 : vector<24x24xi1>, vector<24x24xf32>
    %62 = arith.addf %61, %1 : vector<24x24xf32>
    %cst_28 = arith.constant dense<0xFF800000> : vector<24xf32>
    %63 = vector.multi_reduction <maximumf>, %62, %cst_28 [1] : vector<24x24xf32> to vector<24xf32>
    %64 = vector.shape_cast %63 : vector<24xf32> to vector<24x1xf32>
    %65 = vector.broadcast %64 : vector<24x1xf32> to vector<24x24xf32>
    %66 = arith.subf %62, %65 : vector<24x24xf32>
    %67 = math.exp %66 : vector<24x24xf32>
    %cst_29 = arith.constant dense<0.000000e+00> : vector<24xf32>
    %68 = vector.multi_reduction <add>, %67, %cst_29 [1] : vector<24x24xf32> to vector<24xf32>
    %69 = vector.shape_cast %68 : vector<24xf32> to vector<24x1xf32>
    %70 = tpu.reciprocal %69 {approx = true} : vector<24x1xf32> -> vector<24x1xf32>
    %71 = arith.truncf %67 : vector<24x24xf32> to vector<24x24xbf16>
    %c2_30 = arith.constant 2 : index
    %c0_31 = arith.constant 0 : index
    %c0_32 = arith.constant 0 : index
    %72 = vector.load %arg2[%c2_30, %c0_31, %c0_32] : memref<4x24x16xbf16, #tpu.memory_space<vmem>>, vector<1x24x16xbf16>
    %73 = vector.shape_cast %72 : vector<1x24x16xbf16> to vector<24x16xbf16>
    %cst_33 = arith.constant dense<0.000000e+00> : vector<24x16xf32>
    %74 = tpu.matmul %71, %73, %cst_33 {dimension_numbers = #tpu.dot_dimension_numbers<[1], [0], [0], [1], [0, 0, 1, 1], [], []>} : vector<24x24xbf16>, vector<24x16xbf16>, vector<24x16xf32> -> vector<24x16xf32>
    %75 = vector.broadcast %70 : vector<24x1xf32> to vector<24x16xf32>
    %76 = arith.mulf %74, %75 : vector<24x16xf32>
    %c0_34 = arith.constant 0 : index
    %c3 = arith.constant 3 : index
    %77 = vector.load %arg4[%c0_34, %c3] : memref<24x4xf32, #tpu.memory_space<vmem>>, vector<24x1xf32>
    %c3_35 = arith.constant 3 : index
    %c0_36 = arith.constant 0 : index
    %78 = vector.load %arg3[%c3_35, %c0_36] : memref<4x24xf32, #tpu.memory_space<vmem>>, vector<1x24xf32>
    %79 = vector.broadcast %77 : vector<24x1xf32> to vector<24x24xf32>
    %80 = vector.broadcast %78 : vector<1x24xf32> to vector<24x24xf32>
    %81 = arith.addf %79, %80 : vector<24x24xf32>
    %cst_37 = arith.constant 0.000000e+00 : f32
    %82 = vector.broadcast %cst_37 : f32 to vector<24x24xf32>
    %83 = arith.cmpf ogt, %81, %82 : vector<24x24xf32>
    %cst_38 = arith.constant 2.000000e-01 : f32
    %84 = vector.broadcast %cst_38 : f32 to vector<24x24xf32>
    %85 = arith.mulf %84, %81 : vector<24x24xf32>
    %86 = arith.select %83, %81, %85 : vector<24x24xi1>, vector<24x24xf32>
    %87 = arith.addf %86, %1 : vector<24x24xf32>
    %cst_39 = arith.constant dense<0xFF800000> : vector<24xf32>
    %88 = vector.multi_reduction <maximumf>, %87, %cst_39 [1] : vector<24x24xf32> to vector<24xf32>
    %89 = vector.shape_cast %88 : vector<24xf32> to vector<24x1xf32>
    %90 = vector.broadcast %89 : vector<24x1xf32> to vector<24x24xf32>
    %91 = arith.subf %87, %90 : vector<24x24xf32>
    %92 = math.exp %91 : vector<24x24xf32>
    %cst_40 = arith.constant dense<0.000000e+00> : vector<24xf32>
    %93 = vector.multi_reduction <add>, %92, %cst_40 [1] : vector<24x24xf32> to vector<24xf32>
    %94 = vector.shape_cast %93 : vector<24xf32> to vector<24x1xf32>
    %95 = tpu.reciprocal %94 {approx = true} : vector<24x1xf32> -> vector<24x1xf32>
    %96 = arith.truncf %92 : vector<24x24xf32> to vector<24x24xbf16>
    %c3_41 = arith.constant 3 : index
    %c0_42 = arith.constant 0 : index
    %c0_43 = arith.constant 0 : index
    %97 = vector.load %arg2[%c3_41, %c0_42, %c0_43] : memref<4x24x16xbf16, #tpu.memory_space<vmem>>, vector<1x24x16xbf16>
    %98 = vector.shape_cast %97 : vector<1x24x16xbf16> to vector<24x16xbf16>
    %cst_44 = arith.constant dense<0.000000e+00> : vector<24x16xf32>
    %99 = tpu.matmul %96, %98, %cst_44 {dimension_numbers = #tpu.dot_dimension_numbers<[1], [0], [0], [1], [0, 0, 1, 1], [], []>} : vector<24x24xbf16>, vector<24x16xbf16>, vector<24x16xf32> -> vector<24x16xf32>
    %100 = vector.broadcast %95 : vector<24x1xf32> to vector<24x16xf32>
    %101 = arith.mulf %99, %100 : vector<24x16xf32>
    %102 = tpu.concatenate %26, %51, %76, %101 in 1 : vector<24x16xf32>, vector<24x16xf32>, vector<24x16xf32>, vector<24x16xf32> -> vector<24x64xf32>
    %c0_45 = arith.constant 0 : index
    %c0_46 = arith.constant 0 : index
    %103 = vector.load %arg5[%c0_45, %c0_46] : memref<1x64xf32, #tpu.memory_space<vmem>>, vector<1x64xf32>
    %104 = vector.broadcast %103 : vector<1x64xf32> to vector<24x64xf32>
    %105 = arith.addf %102, %104 : vector<24x64xf32>
    %cst_47 = arith.constant 0.000000e+00 : f32
    %106 = vector.broadcast %cst_47 : f32 to vector<24x64xf32>
    %107 = arith.maximumf %105, %106 : vector<24x64xf32>
    %c0_48 = arith.constant 0 : index
    %c0_49 = arith.constant 0 : index
    %108 = vector.load %arg6[%c0_48, %c0_49] : memref<1x64xf32, #tpu.memory_space<vmem>>, vector<1x64xf32>
    %cst_50 = arith.constant dense<0.000000e+00> : vector<1x24xf32>
    %109 = tpu.matmul %108, %107, %cst_50 {dimension_numbers = #tpu.dot_dimension_numbers<[1], [1], [0], [0], [0, 0, 1, 0], [], []>} : vector<1x64xf32>, vector<24x64xf32>, vector<1x24xf32> -> vector<1x24xf32>
    %c0_51 = arith.constant 0 : index
    %c0_52 = arith.constant 0 : index
    %110 = vector.load %arg7[%c0_51, %c0_52] : memref<1x24xf32, #tpu.memory_space<vmem>>, vector<1x24xf32>
    tpu.vector_store %arg7[%c0_51, %c0_52], %109 {strides = array<i32>} : memref<1x24xf32, #tpu.memory_space<vmem>>, vector<1x24xf32>,
    return
  }
  func.func @transform_0(%arg0: i32) -> (i32, i32) {
    %c0_i32 = arith.constant 0 : i32
    %c0_i32_0 = arith.constant 0 : i32
    return %arg0, %c0_i32 : i32, i32
  }
  func.func @transform_1(%arg0: i32) -> (i32, i32, i32) {
    %c0_i32 = arith.constant 0 : i32
    %c0_i32_0 = arith.constant 0 : i32
    %c0_i32_1 = arith.constant 0 : i32
    %c0_i32_2 = arith.constant 0 : i32
    return %c0_i32, %c0_i32_0, %c0_i32_1 : i32, i32, i32
  }
  func.func @transform_2(%arg0: i32) -> (i32, i32) {
    %c0_i32 = arith.constant 0 : i32
    %c0_i32_0 = arith.constant 0 : i32
    %c0_i32_1 = arith.constant 0 : i32
    return %c0_i32, %c0_i32_0 : i32, i32
  }
  func.func @transform_3(%arg0: i32) -> (i32, i32) {
    %c0_i32 = arith.constant 0 : i32
    %c0_i32_0 = arith.constant 0 : i32
    return %arg0, %c0_i32 : i32, i32
  }
  func.func @transform_4(%arg0: i32) -> (i32, i32) {
    %c0_i32 = arith.constant 0 : i32
    %c0_i32_0 = arith.constant 0 : i32
    %c0_i32_1 = arith.constant 0 : i32
    return %c0_i32, %c0_i32_0 : i32, i32
  }
  func.func @transform_5(%arg0: i32) -> (i32, i32) {
    %c0_i32 = arith.constant 0 : i32
    %c0_i32_0 = arith.constant 0 : i32
    %c0_i32_1 = arith.constant 0 : i32
    return %c0_i32, %c0_i32_0 : i32, i32
  }
  func.func @transform_6(%arg0: i32) -> (i32, i32) {
    %c0_i32 = arith.constant 0 : i32
    %c0_i32_0 = arith.constant 0 : i32
    return %c0_i32, %arg0 : i32, i32
  }
}

</mosaic_0001>

<bundles_post_ra>
// kernel: tpu_custom_call.1
= control target key start
LH: loop header
LB: loop body
LE: loop exit
PB: predicated region body
PF: predicated region fallthrough
CT: control target
= control target key end

     0   :  { %v953_v2 = vmov 0   ;;  %v954_v4 = vmov 1   ;;  %s1216_s0 = inlined_call_operand.vmem [shape: bf16[24,24], index: 0, kind: input, shape index: {}]   ;;  %s1217_s1 = inlined_call_operand.vmem [shape: bf16[4,24,16], index: 1, kind: input, shape index: {}]   ;;  %s1218_s2 = inlined_call_operand.vmem [shape: f32[4,24], index: 2, kind: input, shape index: {}]   ;;  %s1219_s3 = inlined_call_operand.vmem [shape: f32[24,4], index: 3, kind: input, shape index: {}]   ;;  %s1220_s4 = inlined_call_operand.vmem [shape: f32[1,64], index: 4, kind: input, shape index: {}]   ;;  %s1221_s5 = inlined_call_operand.vmem [shape: f32[1,64], index: 5, kind: input, shape index: {}]   ;;  %s1222_s6 = inlined_call_operand.hbm [shape: f32[1,24], index: 6, kind: output, shape index: {}]  }
   0x1   :  { %v33_v0 = vld [vmem:[%s1219_s3 + $0x10] sm:$0xff]  ;;  %v31_v1 = vld [vmem:[%s1219_s3] sm:$0xff]  ;;  %866 = vset.pattern.permute.xlu1 %v953_v2  ;;  %865 = vset.pattern.permute.xlu0 %v953_v2  ;;  %v32_v3 = vld [vmem:[%s1219_s3 + $0x8] sm:$0xff] }
   0x2   :  { %47 = vperm.xlu1 %866, %v33_v0   ;;  %37 = vperm.xlu0 %865, %v31_v1  }
   0x6   :  { %867 = vset.pattern.permute.xlu1 %v954_v4  ;;  %42 = vperm.xlu0 %865, %v32_v3  }
   0x7   :  { %11 = vsyncpa [#allocation3], 0  ;;  %177 = vperm.xlu1 %867, %v31_v1   ;;  %v955_v5 = vmov 2   ;;  %v956_v6 = vmov 3   ;;  %v747_v7 = vld [vmem:[%s1218_s2] ss:$0 sm:$0xff] }
   0x8   :  { %v782_v8 = vld [vmem:[%s1216_s0] sm:$0xff]   ;;  %v27_v18 = vld [vmem:[%s1216_s0 + $0x8] sm:$0xf]  ;;  %vm69_vm2 = vcmask 195584   ;;  %vm120_vm13 = vcmask 1043456   ;;  %s958_s27 = smov 32  }
   0x9   :  { %v1014_v13 = vunpack.c.l.bf16 %v782_v8  ;;  %v752_v15 = vld [vmem:[%s1218_s2 + $0x1] ss:$0 sm:$0xff]  ;;  %v1025_v24 = vunpack.c.h.bf16 %v782_v8  ;;  %v1027_v26 = vunpack.c.l.bf16 %v27_v18  ;;  %v760_v37 = vld [vmem:[%s1218_s2 + $0x2] ss:$0 sm:$0xff]  ;;  %v768_v53 = vld [vmem:[%s1218_s2 + $0x3] ss:$0 sm:$0xff] }
   0xa   :  { %868 = vset.pattern.permute.xlu0 %v954_v4  ;;  %s960_s28 = smov 48   ;;  %vm961_vm14 = vmmov 0   ;;  %vm622_vm15 = vcmask 130048   ;;  %s963_s8 = smov [#allocation2]  }
   0xb   :  { %185 = vperm.xlu1 %867, %v33_v0   ;;  %181 = vperm.xlu0 %868, %v32_v3   ;;  %s739_s9 = sshll.u32 %s963_s8, 4  ;;  %s740_s9 = int_to_ptr.vmem [resolvable:$true] %s739_s9 }
   0xc   :  { %s929_s0 = scalar_lea.vmem %s740_s9, 16  ;;  %s933_s10 = scalar_lea.vmem %s740_s9, 32 }
   0xd   :  { %p930_p0 = scmp.ne.s32.totalorder %s740_s9, %s929_s0  ;;  %p934_p1 = scmp.lt.s32.totalorder %s740_s9, %s740_s9 }
   0xe   :  { %p935_p2 = scmp.lt.s32.totalorder %s933_s10, %s929_s0 }
   0xf   :  { %869 = vset.pattern.permute.xlu1 %v955_v5  ;;  %870 = vset.pattern.permute.xlu0 %v955_v5 }
  0x10   :  { %314 = vperm.xlu1 %869, %v31_v1   ;;  %318 = vperm.xlu0 %870, %v32_v3   ;;  %p936_p3 = por %p935_p2, %p934_p1 }
  0x12   :  { %p937_p4 = pnand %p936_p3, %p930_p0 }
  0x14   :  { %322 = vperm.xlu1 %869, %v33_v0   ;;  %872 = vset.pattern.permute.xlu0 %v956_v6 }
  0x15   :  { %455 = vperm.xlu0 %872, %v32_v3  }
  0x18   :  { %871 = vset.pattern.permute.xlu1 %v956_v6 }
  0x19   :  { %451 = vperm.xlu1 %871, %v31_v1  }
  0x1d   :  { %459 = vperm.xlu1 %871, %v33_v0  }
  0x81   :  { %v48_v9 = vpop.permute.xlu1 %47  ;;  %v38_v10 = vpop.permute.xlu0 %37 }
  0x82   :  { %v56_v11 = vadd.f32 %v747_v7, %v48_v9  ;;  %v54_v12 = vadd.f32 %v747_v7, %v38_v10 }
  0x84   :  { %vm57_vm0 = vcmp.gt.f32.partialorder %v54_v12, 0.0  ;;  %v60_v14 = vmul.f32 0.2, %v54_v12  ;;  %v62_v16 = vmul.f32 0.2, %v56_v11  ;;  %vm59_vm1 = vcmp.gt.f32.partialorder %v56_v11, 0.0 }
  0x85   :  { %v43_v17 = vpop.permute.xlu0 %42 }
  0x86   :  { %v55_v19 = vadd.f32 %v747_v7, %v43_v17  ;;  %v178_v20 = vpop.permute.xlu1 %177  ;;  %v63_v21 = vsel %vm57_vm0, %v54_v12, %v60_v14  ;;  %v65_v29 = vsel %vm59_vm1, %v56_v11, %v62_v16  ;;  %vm626_vm0 = vcmask 261120  }
  0x87   :  { %v192_v22 = vadd.f32 %v752_v15, %v178_v20  ;;  %v1023_v23 = vadd.f32 %v1014_v13, %v63_v21  ;;  %v1041_v39 = vadd.f32 %v65_v29, %v1027_v26  ;;  %v876_v29 = vld [vmem:[%s1217_s1 + $0x14] ss:$0 sps:$4 sm:$0xff]   ;;  %vm630_vm1 = vcmask 392192  }
  0x88   :  { %vm58_vm3 = vcmp.gt.f32.partialorder %v55_v19, 0.0  ;;  %v61_v25 = vmul.f32 0.2, %v55_v19 }
  0x89   :  { %vm195_vm4 = vcmp.gt.f32.partialorder %v192_v22, 0.0  ;;  %v198_v27 = vmul.f32 0.2, %v192_v22  ;;  %v70_v28 = vsel %vm69_vm2, %v1023_v23, -inf  ;;  %v76_v52 = vsel %vm69_vm2, %v1041_v39, -inf }
  0x8a   :  { %v186_v30 = vpop.permute.xlu1 %185  ;;  %71 = vmax.xlane.f32.xlu1 %v70_v28  ;;  %v182_v31 = vpop.permute.xlu0 %181  ;;  %v64_v32 = vsel %vm58_vm3, %v55_v19, %v61_v25 }
  0x8b   :  { %v194_v33 = vadd.f32 %v752_v15, %v186_v30  ;;  %v193_v34 = vadd.f32 %v752_v15, %v182_v31  ;;  %v1032_v35 = vadd.f32 %v1025_v24, %v64_v32  ;;  %v201_v36 = vsel %vm195_vm4, %v192_v22, %v198_v27  ;;  %v874_v27 = vld [vmem:[%s1217_s1 + $0x8] ss:$0 sps:$4 sm:$0xff]   ;;  %v877_v31 = vld [vmem:[%s1217_s1 + $0x18] sm:$0xff]  }
  0x8c   :  { %v1038_v38 = vadd.f32 %v1014_v13, %v201_v36  ;;  %v122_v28 = vsel %vm120_vm13, %v874_v27, 0  ;;  %v259_v30 = vsel %vm120_vm13, %v876_v29, 0  ;;  %v1114_v32 = vld [vmem:[%s1217_s1 + $0x24] sm:$0xff]   ;;  %vm731_vm4 = vcmask 188416  }
  0x8d   :  { %vm197_vm5 = vcmp.gt.f32.partialorder %v194_v33, 0.0  ;;  %v200_v40 = vmul.f32 0.2, %v194_v33  ;;  %vm196_vm6 = vcmp.gt.f32.partialorder %v193_v34, 0.0  ;;  %v199_v41 = vmul.f32 0.2, %v193_v34 }
  0x8e   :  { %v73_v42 = vsel %vm69_vm2, %v1032_v35, -inf  ;;  %v207_v43 = vsel %vm69_vm2, %v1038_v38, -inf }
  0x8f   :  { %74 = vmax.xlane.f32.xlu0 %v73_v42  ;;  %v315_v44 = vpop.permute.xlu1 %314  ;;  %v319_v45 = vpop.permute.xlu0 %318  ;;  %208 = vmax.xlane.f32.xlu1 %v207_v43  ;;  %v203_v46 = vsel %vm197_vm5, %v194_v33, %v200_v40  ;;  %v202_v47 = vsel %vm196_vm6, %v193_v34, %v199_v41 }
  0x90   :  { %v329_v48 = vadd.f32 %v760_v37, %v315_v44  ;;  %v330_v49 = vadd.f32 %v760_v37, %v319_v45  ;;  %v1048_v50 = vadd.f32 %v203_v46, %v1027_v26  ;;  %v1051_v51 = vadd.f32 %v1025_v24, %v202_v47 }
  0x92   :  { %vm332_vm7 = vcmp.gt.f32.partialorder %v329_v48, 0.0  ;;  %v335_v54 = vmul.f32 0.2, %v329_v48  ;;  %vm333_vm8 = vcmp.gt.f32.partialorder %v330_v49, 0.0  ;;  %v336_v55 = vmul.f32 0.2, %v330_v49 }
  0x93   :  { %77 = vmax.xlane.f32.xlu0 %v76_v52  ;;  %v323_v56 = vpop.permute.xlu1 %322  ;;  %v213_v57 = vsel %vm69_vm2, %v1048_v50, -inf  ;;  %v210_v59 = vsel %vm69_vm2, %v1051_v51, -inf }
  0x94   :  { %v331_v58 = vadd.f32 %v760_v37, %v323_v56  ;;  %214 = vmax.xlane.f32.xlu1 %v213_v57  ;;  %v339_v60 = vsel %vm333_vm8, %v330_v49, %v336_v55  ;;  %v456_v61 = vpop.permute.xlu0 %455  ;;  %v338_v62 = vsel %vm332_vm7, %v329_v48, %v335_v54 }
  0x95   :  { %v1063_v63 = vadd.f32 %v1025_v24, %v339_v60  ;;  %v467_v0 = vadd.f32 %v768_v53, %v456_v61  ;;  %v1066_v2 = vadd.f32 %v1014_v13, %v338_v62 }
  0x96   :  { %vm334_vm9 = vcmp.gt.f32.partialorder %v331_v58, 0.0  ;;  %v337_v1 = vmul.f32 0.2, %v331_v58 }
  0x97   :  { %211 = vmax.xlane.f32.xlu0 %v210_v59  ;;  %v347_v3 = vsel %vm69_vm2, %v1063_v63, -inf  ;;  %vm470_vm10 = vcmp.gt.f32.partialorder %v467_v0, 0.0  ;;  %v473_v4 = vmul.f32 0.2, %v467_v0  ;;  %v344_v9 = vsel %vm69_vm2, %v1066_v2, -inf }
  0x98   :  { %v452_v5 = vpop.permute.xlu1 %451  ;;  %348 = vmax.xlane.f32.xlu1 %v347_v3  ;;  %v340_v6 = vsel %vm334_vm9, %v331_v58, %v337_v1 }
  0x99   :  { %v466_v7 = vadd.f32 %v768_v53, %v452_v5  ;;  %v476_v8 = vsel %vm470_vm10, %v467_v0, %v473_v4  ;;  %v1073_v10 = vadd.f32 %v340_v6, %v1027_v26  ;;  %v878_v5 = vld [vmem:[%s1217_s1 + $0x20] ss:$0 sps:$4 sm:$0xff]  }
  0x9a   :  { %v1076_v14 = vadd.f32 %v1025_v24, %v476_v8 }
  0x9b   :  { %vm469_vm11 = vcmp.gt.f32.partialorder %v466_v7, 0.0  ;;  %v472_v11 = vmul.f32 0.2, %v466_v7  ;;  %345 = vmax.xlane.f32.xlu0 %v344_v9  ;;  %v350_v17 = vsel %vm69_vm2, %v1073_v10, -inf }
  0x9c   :  { %v460_v12 = vpop.permute.xlu1 %459  ;;  %v484_v21 = vsel %vm69_vm2, %v1076_v14, -inf }
  0x9d   :  { %v468_v15 = vadd.f32 %v768_v53, %v460_v12  ;;  %v475_v16 = vsel %vm469_vm11, %v466_v7, %v472_v11 }
  0x9e   :  { %v1081_v18 = vadd.f32 %v1014_v13, %v475_v16  ;;  %v873_v13 = vld [vmem:[%s1217_s1] sm:$0xff]  }
  0x9f   :  { %vm471_vm12 = vcmp.gt.f32.partialorder %v468_v15, 0.0  ;;  %v474_v19 = vmul.f32 0.2, %v468_v15  ;;  %351 = vmax.xlane.f32.xlu0 %v350_v17  ;;  %805 = vmatprep.subr.bf16.mxu0 %v873_v13  ;;  %v396_v17 = vsel %vm120_vm13, %v878_v5, 0 }
  0xa0   :  { %v481_v20 = vsel %vm69_vm2, %v1081_v18, -inf  ;;  %806 = vmatpush3.bf16.msra.mxu0 %v873_v13 }
  0xa1   :  { %482 = vmax.xlane.f32.xlu1 %v481_v20  ;;  %v477_v22 = vsel %vm471_vm12, %v468_v15, %v474_v19  ;;  %850 = vmatprep.subr.msk.bf16.mxu0 %vm120_vm13, %v874_v27  ;;  %v880_v20 = vld [vmem:[%s1217_s1 + $0x2c] ss:$0 sps:$4 sm:$0xff]  }
  0xa2   :  { %v1088_v24 = vadd.f32 %v477_v22, %v1027_v26  ;;  %v875_v26 = vld [vmem:[%s1217_s1 + $0xc] sm:$0xff]   ;;  %v533_v13 = vsel %vm120_vm13, %v880_v20, 0  ;;  %s957_s1 = smov 16  }
  0xa3   :  { %485 = vmax.xlane.f32.xlu0 %v484_v21  ;;  %813 = vmatprep.subr.bf16.mxu1 %v875_v26 }
  0xa4   :  { %v487_v25 = vsel %vm69_vm2, %v1088_v24, -inf  ;;  %808 = vmatpush3.bf16.msra.mxu0 %v122_v28  ;;  %814 = vmatpush3.bf16.msra.mxu1 %v875_v26 }
  0xa5   :  { %488 = vmax.xlane.f32.xlu1 %v487_v25  ;;  %851 = vmatprep.subr.msk.bf16.mxu1 %vm120_vm13, %v876_v29 }
  0xa6   :  { %821 = vmatprep.subr.bf16.mxu0 %v877_v31 }
  0xa8   :  { %816 = vmatpush3.bf16.msra.mxu1 %v259_v30 }
  0xa9   :  { %829 = vmatprep.subr.bf16.mxu1 %v1114_v32 }
 0x117   :  { %v72_v33 = vpop.xlane.xlu1 %71 }
 0x118   :  { %v79_v34 = vsub.f32 %v1023_v23, %v72_v33 }
 0x11a   :  { %v82_v36 = vmul.f32 1.442695, %v79_v34 }
 0x11c   :  { %v75_v37 = vpop.xlane.xlu0 %74  ;;  %v209_v40 = vpop.xlane.xlu1 %208  ;;  %881 = vpow2.f32 %v82_v36 }
 0x11d   :  { %v80_v41 = vsub.f32 %v1032_v35, %v75_v37  ;;  %v216_v42 = vsub.f32 %v1038_v38, %v209_v40 }
 0x11f   :  { %v84_v43 = vmul.f32 1.442695, %v80_v41  ;;  %v219_v44 = vmul.f32 1.442695, %v216_v42 }
 0x120   :  { %v78_v45 = vpop.xlane.xlu0 %77 }
 0x121   :  { %883 = vpow2.f32 %v84_v43  ;;  %v81_v46 = vsub.f32 %v1041_v39, %v78_v45  ;;  %v215_v47 = vpop.xlane.xlu1 %214 }
 0x122   :  { %885 = vpow2.f32 %v219_v44  ;;  %v218_v48 = vsub.f32 %v1048_v50, %v215_v47 }
 0x123   :  { %v86_v49 = vmul.f32 1.442695, %v81_v46 }
 0x124   :  { %v223_v23 = vmul.f32 1.442695, %v218_v48  ;;  %v212_v52 = vpop.xlane.xlu0 %211 }
 0x125   :  { %887 = vpow2.f32 %v86_v49  ;;  %v217_v53 = vsub.f32 %v1051_v51, %v212_v52  ;;  %v349_v35 = vpop.xlane.xlu1 %348 }
 0x126   :  { %v354_v38 = vsub.f32 %v1063_v63, %v349_v35  ;;  %889 = vpow2.f32 %v223_v23  ;;  %v1125_v57 = vpop.eup %881 }
 0x127   :  { %v221_v54 = vmul.f32 1.442695, %v217_v53  ;;  %v88_v41 = vsel %vm69_vm2, %v1125_v57, 0.0 }
 0x128   :  { %v358_v55 = vmul.f32 1.442695, %v354_v38  ;;  %v346_v56 = vpop.xlane.xlu0 %345 }
 0x129   :  { %891 = vpow2.f32 %v221_v54  ;;  %v353_v39 = vsub.f32 %v1066_v2, %v346_v56 }
 0x12a   :  { %893 = vpow2.f32 %v358_v55 }
 0x12b   :  { %v1127_v58 = vpop.eup %883  ;;  %v356_v50 = vmul.f32 1.442695, %v353_v39 }
 0x12c   :  { %v886_v59 = vpop.eup %885  ;;  %v352_v60 = vpop.xlane.xlu0 %351  ;;  %v100_v51 = vpack.c.bf16 %v1127_v58, %v1125_v57  ;;  %v91_v42 = vsel %vm69_vm2, %v1127_v58, 0.0 }
 0x12d   :  { %895 = vpow2.f32 %v356_v50  ;;  %v355_v61 = vsub.f32 %v1073_v10, %v352_v60  ;;  %v225_v62 = vsel %vm69_vm2, %v886_v59, 0.0 }
 0x12e   :  { %809 = vmatprep.mubr.msk.bf16.mxu0 %vm69_vm2, %v100_v51  ;;  %226 = vadd.xlane.f32.xlu0 %v225_v62  ;;  %v483_v63 = vpop.xlane.xlu1 %482 }
 0x12f   :  { %v1134_v0 = vpop.eup %887  ;;  %v360_v1 = vmul.f32 1.442695, %v355_v61  ;;  %v490_v2 = vsub.f32 %v1081_v18, %v483_v63 }
 0x130   :  { %v486_v3 = vpop.xlane.xlu0 %485  ;;  %v101_v4 = vpack.c.bf16 %v1134_v0, %v1134_v0  ;;  %v890_v8 = vpop.eup %889  ;;  %v94_v43 = vsel %vm69_vm2, %v1134_v0, 0.0 }
 0x131   :  { %897 = vpow2.f32 %v360_v1  ;;  %v493_v6 = vmul.f32 1.442695, %v490_v2  ;;  %v491_v7 = vsub.f32 %v1076_v14, %v486_v3  ;;  %v238_v19 = vpack.c.bf16 %v890_v8, %v890_v8 }
 0x132   :  { %810 = vmatmul.mubr.msk.bf16.vlgmr.msra.gmra.mrb[0].mxu0 %vm69_vm2, %v101_v4  ;;  %v489_v9 = vpop.xlane.xlu1 %488  ;;  %v231_v34 = vsel %vm69_vm2, %v890_v8, 0.0  ;;  %v959_v8 = vmov 0.0|0.0  }
 0x133   :  { %v892_v10 = vpop.eup %891  ;;  %899 = vpow2.f32 %v493_v6  ;;  %v495_v11 = vmul.f32 1.442695, %v491_v7  ;;  %v492_v12 = vsub.f32 %v1088_v24, %v489_v9  ;;  %822 = vmatpush3.bf16.msra.mxu0 %v877_v31 }
 0x134   :  { %v228_v15 = vsel %vm69_vm2, %v892_v10, 0.0  ;;  %v237_v16 = vpack.c.bf16 %v892_v10, %v886_v59  ;;  %852 = vmatprep.subr.msk.bf16.mxu0 %vm120_vm13, %v878_v5  ;;  %v894_v18 = vpop.eup %893 }
 0x135   :  { %901 = vpow2.f32 %v495_v11  ;;  %v497_v14 = vmul.f32 1.442695, %v492_v12  ;;  %229 = vadd.xlane.f32.xlu1 %v228_v15  ;;  %v365_v24 = vsel %vm69_vm2, %v894_v18, 0.0 }
 0x136   :  { %817 = vmatprep.mubr.msk.bf16.mxu1 %vm69_vm2, %v237_v16 }
 0x137   :  { %v896_v21 = vpop.eup %895  ;;  %903 = vpow2.f32 %v497_v14  ;;  %818 = vmatmul.mubr.msk.bf16.vlgmr.msra.gmra.mrb[0].mxu1 %vm69_vm2, %v238_v19  ;;  %824 = vmatpush3.bf16.msra.mxu0 %v396_v17 }
 0x138   :  { %v362_v22 = vsel %vm69_vm2, %v896_v21, 0.0  ;;  %v374_v25 = vpack.c.bf16 %v894_v18, %v896_v21  ;;  %830 = vmatpush3.bf16.msra.mxu1 %v1114_v32  ;;  %846 = vmatprep.subr.bf16.mxu0 %v959_v8 }
 0x139   :  { %363 = vadd.xlane.f32.xlu0 %v362_v22  ;;  %366 = vadd.xlane.f32.xlu1 %v365_v24 }
 0x13a   :  { %825 = vmatprep.mubr.msk.bf16.mxu0 %vm69_vm2, %v374_v25  ;;  %853 = vmatprep.subr.msk.bf16.mxu1 %vm120_vm13, %v880_v20  ;;  %v962_v20 = vmov 0.0  }
 0x13b   :  { %v898_v27 = vpop.eup %897 }
 0x13c   :  { %v375_v26 = vpack.c.bf16 %v898_v27, %v898_v27  ;;  %832 = vmatpush3.bf16.msra.mxu1 %v533_v13  ;;  %v368_v37 = vsel %vm69_vm2, %v898_v27, 0.0 }
 0x13d   :  { %v900_v28 = vpop.eup %899 }
 0x13e   :  { %826 = vmatmul.mubr.msk.bf16.vlgmr.msra.gmra.mrb[4].mxu0 %vm69_vm2, %v375_v26  ;;  %v499_v29 = vsel %vm69_vm2, %v900_v28, 0.0 }
 0x13f   :  { %v902_v30 = vpop.eup %901  ;;  %500 = vadd.xlane.f32.xlu0 %v499_v29  ;;  %843 = vmatprep.mubr.msk.f32.mxu0 %vm961_vm14, %v962_v20 }
 0x140   :  { %v502_v31 = vsel %vm69_vm2, %v902_v30, 0.0  ;;  %v511_v32 = vpack.c.bf16 %v902_v30, %v900_v28 }
 0x141   :  { %v904_v33 = vpop.eup %903  ;;  %503 = vadd.xlane.f32.xlu1 %v502_v31 }
 0x142   :  { %833 = vmatprep.mubr.msk.bf16.mxu1 %vm69_vm2, %v511_v32  ;;  %v512_v36 = vpack.c.bf16 %v904_v33, %v904_v33  ;;  %v505_v40 = vsel %vm69_vm2, %v904_v33, 0.0 }
 0x143   :  { %232 = vadd.xlane.f32.xlu0 %v231_v34  ;;  %v776_v34 = vld [vmem:[%s1220_s4] ss:$0 sm:$0xff] }
 0x144   :  { %834 = vmatmul.mubr.msk.bf16.vlgmr.msra.gmra.mrb[4].mxu1 %vm69_vm2, %v512_v36  ;;  %vm648_vm2 = vcmask 523264  }
 0x145   :  { %369 = vadd.xlane.f32.xlu1 %v368_v37  ;;  %vm848_vm3 = vmpackc.low %vm648_vm2, %vm648_vm2 }
 0x147   :  { %506 = vadd.xlane.f32.xlu0 %v505_v40 }
 0x149   :  { %89 = vadd.xlane.f32.xlu1 %v88_v41 }
 0x14b   :  { %92 = vadd.xlane.f32.xlu0 %v91_v42 }
 0x14d   :  { %95 = vadd.xlane.f32.xlu1 %v94_v43 }
 0x1bb   :  { %v227_v44 = vpop.xlane.xlu0 %226 }
 0x1bc   :  { %905 = vrcp.f32 %v227_v44 }
 0x1c2   :  { %v230_v45 = vpop.xlane.xlu1 %229 }
 0x1c3   :  { %907 = vrcp.f32 %v230_v45 }
 0x1c6   :  { %v364_v46 = vpop.xlane.xlu0 %363  ;;  %v367_v48 = vpop.xlane.xlu1 %366 }
 0x1c7   :  { %909 = vrcp.f32 %v364_v46  ;;  %v906_v38 = vpop.eup %905 }
 0x1c8   :  { %911 = vrcp.f32 %v367_v48 }
 0x1cc   :  { %v501_v23 = vpop.xlane.xlu0 %500 }
 0x1cd   :  { %v908_v57 = vpop.eup %907  ;;  %913 = vrcp.f32 %v501_v23 }
 0x1ce   :  { %v504_v54 = vpop.xlane.xlu1 %503 }
 0x1cf   :  { %915 = vrcp.f32 %v504_v54 }
 0x1d0   :  { %v233_v58 = vpop.xlane.xlu0 %232 }
 0x1d1   :  { %v910_v61 = vpop.eup %909  ;;  %917 = vrcp.f32 %v233_v58  ;;  %v647_v58 = vld [vmem:[%s1221_s5] sm:$0x1] }
 0x1d2   :  { %v370_v60 = vpop.xlane.xlu1 %369  ;;  %v912_v2 = vpop.eup %911 }
 0x1d3   :  { %919 = vrcp.f32 %v370_v60 }
 0x1d4   :  { %v507_v63 = vpop.xlane.xlu0 %506 }
 0x1d5   :  { %921 = vrcp.f32 %v507_v63 }
 0x1d6   :  { %v90_v22 = vpop.xlane.xlu1 %89 }
 0x1d7   :  { %v914_v6 = vpop.eup %913  ;;  %923 = vrcp.f32 %v90_v22 }
 0x1d8   :  { %v93_v24 = vpop.xlane.xlu0 %92 }
 0x1d9   :  { %v916_v11 = vpop.eup %915  ;;  %925 = vrcp.f32 %v93_v24 }
 0x1da   :  { %v96_v25 = vpop.xlane.xlu1 %95 }
 0x1db   :  { %v918_v16 = vpop.eup %917  ;;  %927 = vrcp.f32 %v96_v25 }
 0x1dd   :  { %v920_v18 = vpop.eup %919 }
 0x1df   :  { %v922_v19 = vpop.eup %921 }
 0x1e1   :  { %v924_v26 = vpop.eup %923 }
 0x1e3   :  { %v926_v30 = vpop.eup %925 }
 0x1e5   :  { %v928_v42 = vpop.eup %927 }
 0x205   :  { %v1173_v47 = vpop.f32.mrb[0].mxu0 }
 0x206   :  { %v1175_v49 = vpop.f32.mrb[1].mxu0  ;;  %v174_v46 = vmul.f32 %v928_v42, %v1173_v47 }
 0x207   :  { %v812_v52 = vpop.f32.mrb[2].mxu0  ;;  %v172_v29 = vmul.f32 %v924_v26, %v1175_v49 }
 0x208   :  { %v1177_v53 = vpop.f32.mrb[3].mxu0 }
 0x209   :  { %v173_v32 = vmul.f32 %v926_v30, %v1177_v53 }
 0x20a   :  { %v819_v35 = vpop.f32.mrb[0].mxu1 }
 0x20b   :  { %v295_v55 = vpop.f32.mrb[1].mxu1  ;;  %v311_v17 = vmul.f32 %v918_v16, %v819_v35 }
 0x20c   :  { %v309_v56 = vmul.f32 %v906_v38, %v295_v55  ;;  %v820_v39 = vpop.f32.mrb[2].mxu1 }
 0x20d   :  { %v298_v50 = vpop.f32.mrb[3].mxu1 }
 0x20e   :  { %v310_v59 = vmul.f32 %v908_v57, %v298_v50  ;;  %589 = vrot.lane.b32.xlu0 %v309_v56, %s957_s1 }
 0x210   :  { %591 = vrot.lane.b32.xlu1 %v310_v59, %s957_s1 }
 0x211   :  { %v827_v51 = vpop.f32.mrb[4].mxu0 }
 0x212   :  { %v432_v62 = vpop.f32.mrb[5].mxu0  ;;  %v448_v14 = vmul.f32 %v920_v18, %v827_v51 }
 0x213   :  { %v446_v0 = vmul.f32 %v910_v61, %v432_v62  ;;  %v828_v1 = vpop.f32.mrb[6].mxu0 }
 0x214   :  { %v435_v3 = vpop.f32.mrb[7].mxu0 }
 0x215   :  { %v447_v4 = vmul.f32 %v912_v2, %v435_v3  ;;  %601 = vrot.lane.b32.xlu1 %v446_v0, %s958_s27 }
 0x217   :  { %603 = vrot.lane.b32.xlu0 %v447_v4, %s958_s27  ;;  %v835_v5 = vpop.f32.mrb[4].mxu1 }
 0x218   :  { %v569_v7 = vpop.f32.mrb[5].mxu1  ;;  %v585_v21 = vmul.f32 %v922_v19, %v835_v5 }
 0x219   :  { %v583_v9 = vmul.f32 %v914_v6, %v569_v7  ;;  %v836_v10 = vpop.f32.mrb[6].mxu1 }
 0x21a   :  { %v572_v12 = vpop.f32.mrb[7].mxu1 }
 0x21b   :  { %v584_v15 = vmul.f32 %v916_v11, %v572_v12  ;;  %613 = vrot.lane.b32.xlu1 %v583_v9, %s960_s28 }
 0x21d   :  { %615 = vrot.lane.b32.xlu0 %v584_v15, %s960_s28 }
 0x21f   :  { %593 = vrot.lane.b32.xlu1 %v311_v17, %s957_s1 }
 0x221   :  { %605 = vrot.lane.b32.xlu0 %v448_v14, %s958_s27 }
 0x223   :  { %617 = vrot.lane.b32.xlu1 %v585_v21, %s960_s28 }
 0x280   :  { %v590_v27 = vpop.permute.xlu0 %589 }
 0x281   :  { %v623_v33 = vsel %vm622_vm15, %v172_v29, %v590_v27 }
 0x282   :  { %v592_v13 = vpop.permute.xlu1 %591 }
 0x283   :  { %v624_v40 = vsel %vm622_vm15, %v173_v32, %v592_v13 }
 0x287   :  { %v602_v28 = vpop.permute.xlu1 %601 }
 0x288   :  { %v627_v36 = vsel %vm626_vm0, %v623_v33, %v602_v28 }
 0x289   :  { %v604_v31 = vpop.permute.xlu0 %603 }
 0x28a   :  { %v628_v43 = vsel %vm626_vm0, %v624_v40, %v604_v31 }
 0x28d   :  { %v614_v37 = vpop.permute.xlu1 %613 }
 0x28e   :  { %v631_v41 = vsel %vm630_vm1, %v627_v36, %v614_v37 }
 0x28f   :  { %v641_v44 = vadd.f32 %v776_v34, %v631_v41  ;;  %v616_v45 = vpop.permute.xlu0 %615 }
 0x290   :  { %v632_v48 = vsel %vm630_vm1, %v628_v43, %v616_v45 }
 0x291   :  { %v642_v49 = vadd.f32 %v776_v34, %v632_v48  ;;  %v594_v23 = vpop.permute.xlu1 %593  ;;  %v644_v53 = vmax.f32 %v641_v44, 0.0 }
 0x292   :  { %v625_v52 = vsel %vm622_vm15, %v174_v46, %v594_v23 }
 0x293   :  { %v645_v35 = vmax.f32 %v642_v49, 0.0  ;;  %v606_v38 = vpop.permute.xlu0 %605 }
 0x294   :  { %v629_v54 = vsel %vm626_vm0, %v625_v52, %v606_v38 }
 0x295   :  { %v847_v55 = vpack.c.bf16 %v645_v35, %v644_v53  ;;  %v618_v56 = vpop.permute.xlu1 %617 }
 0x296   :  { %v633_v39 = vsel %vm630_vm1, %v629_v54, %v618_v56 }
 0x297   :  { %849 = vmatpush3.bf16.xpose.msk.msra.mxu0 %vm848_vm3, %v847_v55  ;;  %v643_v47 = vadd.f32 %v776_v34, %v633_v39 }
 0x298   :  { %841 = vmatprep.subr.mxu0 %v962_v20 }
 0x299   :  { %v646_v57 = vmax.f32 %v643_v47, 0.0 }
 0x29f   :  { %842 = vmatpush3.xpose.msk.msra.mxu0 %vm648_vm2, %v646_v57 }
 0x2a2   :  { %844 = vmatmul.mubr.msk.f32.vlgmr.msra.gmra.mrb[8].mxu0 %vm648_vm2, %v647_v58 }
 0x375   :  { %v727_v50 = vpop.f32.mrb[8].mxu0 }
 0x376   :  { %732 = vst.msk [vmem:[#allocation2] sm:$0x1] %vm731_vm4, %v727_v50  ;;  %v845_v59 = vpop.f32.mrb[9].mxu0 }
 0x377   :  { %940 = shalt.err (!%p937_p4)
}
 0x378   :  { %s941_s5 = scalar_lea.hbm %s1222_s6, 16 }
 0x379   :  { %p942_p5 = scmp.ne.s32.totalorder %s1222_s6, %s941_s5  ;;  %p945_p6 = scmp.lt.u32.totalorder %s941_s5, %s1222_s6 }
 0x37b   :  { %p947_p7 = pnand %p945_p6, %p942_p5 }
 0x37d   :  { %950 = shalt.err (!%p947_p7)
}
 0x37e   :  { %742 = dma.vmem_to_hbm [thread:$0]  %s740_s9, 16, %s1222_s6, [#allocation3]  }
 0x37f   :  { %951 = dma.done.wait [#allocation3], 16  }
 0x380   :  { %952 = vsyncadd [#allocation3], 4294967280 }
 0x381   :  { %746 = vsyncpa [#allocation3], 1 }

// kernel: tpu_custom_call.1
= control target key start
LH: loop header
LB: loop body
LE: loop exit
PB: predicated region body
PF: predicated region fallthrough
CT: control target
= control target key end

     0   :  { %v953_v2 = vmov 0   ;;  %v954_v4 = vmov 1   ;;  %s1216_s0 = inlined_call_operand.vmem [shape: bf16[24,24], index: 0, kind: input, shape index: {}]   ;;  %s1217_s1 = inlined_call_operand.vmem [shape: bf16[4,24,16], index: 1, kind: input, shape index: {}]   ;;  %s1218_s2 = inlined_call_operand.vmem [shape: f32[4,24], index: 2, kind: input, shape index: {}]   ;;  %s1219_s3 = inlined_call_operand.vmem [shape: f32[24,4], index: 3, kind: input, shape index: {}]   ;;  %s1220_s4 = inlined_call_operand.vmem [shape: f32[1,64], index: 4, kind: input, shape index: {}]   ;;  %s1221_s5 = inlined_call_operand.vmem [shape: f32[1,64], index: 5, kind: input, shape index: {}]   ;;  %s1222_s6 = inlined_call_operand.hbm [shape: f32[1,24], index: 6, kind: output, shape index: {}]  }
   0x1   :  { %v33_v0 = vld [vmem:[%s1219_s3 + $0x10] sm:$0xff]  ;;  %v31_v1 = vld [vmem:[%s1219_s3] sm:$0xff]  ;;  %866 = vset.pattern.permute.xlu1 %v953_v2  ;;  %865 = vset.pattern.permute.xlu0 %v953_v2  ;;  %v32_v3 = vld [vmem:[%s1219_s3 + $0x8] sm:$0xff] }
   0x2   :  { %47 = vperm.xlu1 %866, %v33_v0   ;;  %37 = vperm.xlu0 %865, %v31_v1  }
   0x6   :  { %867 = vset.pattern.permute.xlu1 %v954_v4  ;;  %42 = vperm.xlu0 %865, %v32_v3  }
   0x7   :  { %11 = vsyncpa [#allocation3], 0  ;;  %177 = vperm.xlu1 %867, %v31_v1   ;;  %v955_v5 = vmov 2   ;;  %v956_v6 = vmov 3   ;;  %v747_v7 = vld [vmem:[%s1218_s2] ss:$0 sm:$0xff] }
   0x8   :  { %v782_v8 = vld [vmem:[%s1216_s0] sm:$0xff]   ;;  %v27_v18 = vld [vmem:[%s1216_s0 + $0x8] sm:$0xf]  ;;  %vm69_vm2 = vcmask 195584   ;;  %vm120_vm13 = vcmask 1043456   ;;  %s958_s27 = smov 32  }
   0x9   :  { %v1014_v13 = vunpack.c.l.bf16 %v782_v8  ;;  %v752_v15 = vld [vmem:[%s1218_s2 + $0x1] ss:$0 sm:$0xff]  ;;  %v1025_v24 = vunpack.c.h.bf16 %v782_v8  ;;  %v1027_v26 = vunpack.c.l.bf16 %v27_v18  ;;  %v760_v37 = vld [vmem:[%s1218_s2 + $0x2] ss:$0 sm:$0xff]  ;;  %v768_v53 = vld [vmem:[%s1218_s2 + $0x3] ss:$0 sm:$0xff] }
   0xa   :  { %868 = vset.pattern.permute.xlu0 %v954_v4  ;;  %s960_s28 = smov 48   ;;  %vm961_vm14 = vmmov 0   ;;  %vm622_vm15 = vcmask 130048   ;;  %s963_s8 = smov [#allocation2]  }
   0xb   :  { %185 = vperm.xlu1 %867, %v33_v0   ;;  %181 = vperm.xlu0 %868, %v32_v3   ;;  %s739_s9 = sshll.u32 %s963_s8, 4  ;;  %s740_s9 = int_to_ptr.vmem [resolvable:$true] %s739_s9 }
   0xc   :  { %s929_s0 = scalar_lea.vmem %s740_s9, 16  ;;  %s933_s10 = scalar_lea.vmem %s740_s9, 32 }
   0xd   :  { %p930_p0 = scmp.ne.s32.totalorder %s740_s9, %s929_s0  ;;  %p934_p1 = scmp.lt.s32.totalorder %s740_s9, %s740_s9 }
   0xe   :  { %p935_p2 = scmp.lt.s32.totalorder %s933_s10, %s929_s0 }
   0xf   :  { %869 = vset.pattern.permute.xlu1 %v955_v5  ;;  %870 = vset.pattern.permute.xlu0 %v955_v5 }
  0x10   :  { %314 = vperm.xlu1 %869, %v31_v1   ;;  %318 = vperm.xlu0 %870, %v32_v3   ;;  %p936_p3 = por %p935_p2, %p934_p1 }
  0x12   :  { %p937_p4 = pnand %p936_p3, %p930_p0 }
  0x14   :  { %322 = vperm.xlu1 %869, %v33_v0   ;;  %872 = vset.pattern.permute.xlu0 %v956_v6 }
  0x15   :  { %455 = vperm.xlu0 %872, %v32_v3  }
  0x18   :  { %871 = vset.pattern.permute.xlu1 %v956_v6 }
  0x19   :  { %451 = vperm.xlu1 %871, %v31_v1  }
  0x1d   :  { %459 = vperm.xlu1 %871, %v33_v0  }
  0x81   :  { %v48_v9 = vpop.permute.xlu1 %47  ;;  %v38_v10 = vpop.permute.xlu0 %37 }
  0x82   :  { %v56_v11 = vadd.f32 %v747_v7, %v48_v9  ;;  %v54_v12 = vadd.f32 %v747_v7, %v38_v10 }
  0x84   :  { %vm57_vm0 = vcmp.gt.f32.partialorder %v54_v12, 0.0  ;;  %v60_v14 = vmul.f32 0.2, %v54_v12  ;;  %v62_v16 = vmul.f32 0.2, %v56_v11  ;;  %vm59_vm1 = vcmp.gt.f32.partialorder %v56_v11, 0.0 }
  0x85   :  { %v43_v17 = vpop.permute.xlu0 %42 }
  0x86   :  { %v55_v19 = vadd.f32 %v747_v7, %v43_v17  ;;  %v178_v20 = vpop.permute.xlu1 %177  ;;  %v63_v21 = vsel %vm57_vm0, %v54_v12, %v60_v14  ;;  %v65_v29 = vsel %vm59_vm1, %v56_v11, %v62_v16  ;;  %vm626_vm0 = vcmask 261120  }
  0x87   :  { %v192_v22 = vadd.f32 %v752_v15, %v178_v20  ;;  %v1023_v23 = vadd.f32 %v1014_v13, %v63_v21  ;;  %v1041_v39 = vadd.f32 %v65_v29, %v1027_v26  ;;  %v876_v29 = vld [vmem:[%s1217_s1 + $0x14] ss:$0 sps:$4 sm:$0xff]   ;;  %vm630_vm1 = vcmask 392192  }
  0x88   :  { %vm58_vm3 = vcmp.gt.f32.partialorder %v55_v19, 0.0  ;;  %v61_v25 = vmul.f32 0.2, %v55_v19 }
  0x89   :  { %vm195_vm4 = vcmp.gt.f32.partialorder %v192_v22, 0.0  ;;  %v198_v27 = vmul.f32 0.2, %v192_v22  ;;  %v70_v28 = vsel %vm69_vm2, %v1023_v23, -inf  ;;  %v76_v52 = vsel %vm69_vm2, %v1041_v39, -inf }
  0x8a   :  { %v186_v30 = vpop.permute.xlu1 %185  ;;  %71 = vmax.xlane.f32.xlu1 %v70_v28  ;;  %v182_v31 = vpop.permute.xlu0 %181  ;;  %v64_v32 = vsel %vm58_vm3, %v55_v19, %v61_v25 }
  0x8b   :  { %v194_v33 = vadd.f32 %v752_v15, %v186_v30  ;;  %v193_v34 = vadd.f32 %v752_v15, %v182_v31  ;;  %v1032_v35 = vadd.f32 %v1025_v24, %v64_v32  ;;  %v201_v36 = vsel %vm195_vm4, %v192_v22, %v198_v27  ;;  %v874_v27 = vld [vmem:[%s1217_s1 + $0x8] ss:$0 sps:$4 sm:$0xff]   ;;  %v877_v31 = vld [vmem:[%s1217_s1 + $0x18] sm:$0xff]  }
  0x8c   :  { %v1038_v38 = vadd.f32 %v1014_v13, %v201_v36  ;;  %v122_v28 = vsel %vm120_vm13, %v874_v27, 0  ;;  %v259_v30 = vsel %vm120_vm13, %v876_v29, 0  ;;  %v1114_v32 = vld [vmem:[%s1217_s1 + $0x24] sm:$0xff]   ;;  %vm731_vm4 = vcmask 188416  }
  0x8d   :  { %vm197_vm5 = vcmp.gt.f32.partialorder %v194_v33, 0.0  ;;  %v200_v40 = vmul.f32 0.2, %v194_v33  ;;  %vm196_vm6 = vcmp.gt.f32.partialorder %v193_v34, 0.0  ;;  %v199_v41 = vmul.f32 0.2, %v193_v34 }
  0x8e   :  { %v73_v42 = vsel %vm69_vm2, %v1032_v35, -inf  ;;  %v207_v43 = vsel %vm69_vm2, %v1038_v38, -inf }
  0x8f   :  { %74 = vmax.xlane.f32.xlu0 %v73_v42  ;;  %v315_v44 = vpop.permute.xlu1 %314  ;;  %v319_v45 = vpop.permute.xlu0 %318  ;;  %208 = vmax.xlane.f32.xlu1 %v207_v43  ;;  %v203_v46 = vsel %vm197_vm5, %v194_v33, %v200_v40  ;;  %v202_v47 = vsel %vm196_vm6, %v193_v34, %v199_v41 }
  0x90   :  { %v329_v48 = vadd.f32 %v760_v37, %v315_v44  ;;  %v330_v49 = vadd.f32 %v760_v37, %v319_v45  ;;  %v1048_v50 = vadd.f32 %v203_v46, %v1027_v26  ;;  %v1051_v51 = vadd.f32 %v1025_v24, %v202_v47 }
  0x92   :  { %vm332_vm7 = vcmp.gt.f32.partialorder %v329_v48, 0.0  ;;  %v335_v54 = vmul.f32 0.2, %v329_v48  ;;  %vm333_vm8 = vcmp.gt.f32.partialorder %v330_v49, 0.0  ;;  %v336_v55 = vmul.f32 0.2, %v330_v49 }
  0x93   :  { %77 = vmax.xlane.f32.xlu0 %v76_v52  ;;  %v323_v56 = vpop.permute.xlu1 %322  ;;  %v213_v57 = vsel %vm69_vm2, %v1048_v50, -inf  ;;  %v210_v59 = vsel %vm69_vm2, %v1051_v51, -inf }
  0x94   :  { %v331_v58 = vadd.f32 %v760_v37, %v323_v56  ;;  %214 = vmax.xlane.f32.xlu1 %v213_v57  ;;  %v339_v60 = vsel %vm333_vm8, %v330_v49, %v336_v55  ;;  %v456_v61 = vpop.permute.xlu0 %455  ;;  %v338_v62 = vsel %vm332_vm7, %v329_v48, %v335_v54 }
  0x95   :  { %v1063_v63 = vadd.f32 %v1025_v24, %v339_v60  ;;  %v467_v0 = vadd.f32 %v768_v53, %v456_v61  ;;  %v1066_v2 = vadd.f32 %v1014_v13, %v338_v62 }
  0x96   :  { %vm334_vm9 = vcmp.gt.f32.partialorder %v331_v58, 0.0  ;;  %v337_v1 = vmul.f32 0.2, %v331_v58 }
  0x97   :  { %211 = vmax.xlane.f32.xlu0 %v210_v59  ;;  %v347_v3 = vsel %vm69_vm2, %v1063_v63, -inf  ;;  %vm470_vm10 = vcmp.gt.f32.partialorder %v467_v0, 0.0  ;;  %v473_v4 = vmul.f32 0.2, %v467_v0  ;;  %v344_v9 = vsel %vm69_vm2, %v1066_v2, -inf }
  0x98   :  { %v452_v5 = vpop.permute.xlu1 %451  ;;  %348 = vmax.xlane.f32.xlu1 %v347_v3  ;;  %v340_v6 = vsel %vm334_vm9, %v331_v58, %v337_v1 }
  0x99   :  { %v466_v7 = vadd.f32 %v768_v53, %v452_v5  ;;  %v476_v8 = vsel %vm470_vm10, %v467_v0, %v473_v4  ;;  %v1073_v10 = vadd.f32 %v340_v6, %v1027_v26  ;;  %v878_v5 = vld [vmem:[%s1217_s1 + $0x20] ss:$0 sps:$4 sm:$0xff]  }
  0x9a   :  { %v1076_v14 = vadd.f32 %v1025_v24, %v476_v8 }
  0x9b   :  { %vm469_vm11 = vcmp.gt.f32.partialorder %v466_v7, 0.0  ;;  %v472_v11 = vmul.f32 0.2, %v466_v7  ;;  %345 = vmax.xlane.f32.xlu0 %v344_v9  ;;  %v350_v17 = vsel %vm69_vm2, %v1073_v10, -inf }
  0x9c   :  { %v460_v12 = vpop.permute.xlu1 %459  ;;  %v484_v21 = vsel %vm69_vm2, %v1076_v14, -inf }
  0x9d   :  { %v468_v15 = vadd.f32 %v768_v53, %v460_v12  ;;  %v475_v16 = vsel %vm469_vm11, %v466_v7, %v472_v11 }
  0x9e   :  { %v1081_v18 = vadd.f32 %v1014_v13, %v475_v16  ;;  %v873_v13 = vld [vmem:[%s1217_s1] sm:$0xff]  }
  0x9f   :  { %vm471_vm12 = vcmp.gt.f32.partialorder %v468_v15, 0.0  ;;  %v474_v19 = vmul.f32 0.2, %v468_v15  ;;  %351 = vmax.xlane.f32.xlu0 %v350_v17  ;;  %805 = vmatprep.subr.bf16.mxu0 %v873_v13  ;;  %v396_v17 = vsel %vm120_vm13, %v878_v5, 0 }
  0xa0   :  { %v481_v20 = vsel %vm69_vm2, %v1081_v18, -inf  ;;  %806 = vmatpush3.bf16.msra.mxu0 %v873_v13 }
  0xa1   :  { %482 = vmax.xlane.f32.xlu1 %v481_v20  ;;  %v477_v22 = vsel %vm471_vm12, %v468_v15, %v474_v19  ;;  %850 = vmatprep.subr.msk.bf16.mxu0 %vm120_vm13, %v874_v27  ;;  %v880_v20 = vld [vmem:[%s1217_s1 + $0x2c] ss:$0 sps:$4 sm:$0xff]  }
  0xa2   :  { %v1088_v24 = vadd.f32 %v477_v22, %v1027_v26  ;;  %v875_v26 = vld [vmem:[%s1217_s1 + $0xc] sm:$0xff]   ;;  %v533_v13 = vsel %vm120_vm13, %v880_v20, 0  ;;  %s957_s1 = smov 16  }
  0xa3   :  { %485 = vmax.xlane.f32.xlu0 %v484_v21  ;;  %813 = vmatprep.subr.bf16.mxu1 %v875_v26 }
  0xa4   :  { %v487_v25 = vsel %vm69_vm2, %v1088_v24, -inf  ;;  %808 = vmatpush3.bf16.msra.mxu0 %v122_v28  ;;  %814 = vmatpush3.bf16.msra.mxu1 %v875_v26 }
  0xa5   :  { %488 = vmax.xlane.f32.xlu1 %v487_v25  ;;  %851 = vmatprep.subr.msk.bf16.mxu1 %vm120_vm13, %v876_v29 }
  0xa6   :  { %821 = vmatprep.subr.bf16.mxu0 %v877_v31 }
  0xa8   :  { %816 = vmatpush3.bf16.msra.mxu1 %v259_v30 }
  0xa9   :  { %829 = vmatprep.subr.bf16.mxu1 %v1114_v32 }
 0x117   :  { %v72_v33 = vpop.xlane.xlu1 %71 }
 0x118   :  { %v79_v34 = vsub.f32 %v1023_v23, %v72_v33 }
 0x11a   :  { %v82_v36 = vmul.f32 1.442695, %v79_v34 }
 0x11c   :  { %v75_v37 = vpop.xlane.xlu0 %74  ;;  %v209_v40 = vpop.xlane.xlu1 %208  ;;  %881 = vpow2.f32 %v82_v36 }
 0x11d   :  { %v80_v41 = vsub.f32 %v1032_v35, %v75_v37  ;;  %v216_v42 = vsub.f32 %v1038_v38, %v209_v40 }
 0x11f   :  { %v84_v43 = vmul.f32 1.442695, %v80_v41  ;;  %v219_v44 = vmul.f32 1.442695, %v216_v42 }
 0x120   :  { %v78_v45 = vpop.xlane.xlu0 %77 }
 0x121   :  { %883 = vpow2.f32 %v84_v43  ;;  %v81_v46 = vsub.f32 %v1041_v39, %v78_v45  ;;  %v215_v47 = vpop.xlane.xlu1 %214 }
 0x122   :  { %885 = vpow2.f32 %v219_v44  ;;  %v218_v48 = vsub.f32 %v1048_v50, %v215_v47 }
 0x123   :  { %v86_v49 = vmul.f32 1.442695, %v81_v46 }
 0x124   :  { %v223_v23 = vmul.f32 1.442695, %v218_v48  ;;  %v212_v52 = vpop.xlane.xlu0 %211 }
 0x125   :  { %887 = vpow2.f32 %v86_v49  ;;  %v217_v53 = vsub.f32 %v1051_v51, %v212_v52  ;;  %v349_v35 = vpop.xlane.xlu1 %348 }
 0x126   :  { %v354_v38 = vsub.f32 %v1063_v63, %v349_v35  ;;  %889 = vpow2.f32 %v223_v23  ;;  %v1125_v57 = vpop.eup %881 }
 0x127   :  { %v221_v54 = vmul.f32 1.442695, %v217_v53  ;;  %v88_v41 = vsel %vm69_vm2, %v1125_v57, 0.0 }
 0x128   :  { %v358_v55 = vmul.f32 1.442695, %v354_v38  ;;  %v346_v56 = vpop.xlane.xlu0 %345 }
 0x129   :  { %891 = vpow2.f32 %v221_v54  ;;  %v353_v39 = vsub.f32 %v1066_v2, %v346_v56 }
 0x12a   :  { %893 = vpow2.f32 %v358_v55 }
 0x12b   :  { %v1127_v58 = vpop.eup %883  ;;  %v356_v50 = vmul.f32 1.442695, %v353_v39 }
 0x12c   :  { %v886_v59 = vpop.eup %885  ;;  %v352_v60 = vpop.xlane.xlu0 %351  ;;  %v100_v51 = vpack.c.bf16 %v1127_v58, %v1125_v57  ;;  %v91_v42 = vsel %vm69_vm2, %v1127_v58, 0.0 }
 0x12d   :  { %895 = vpow2.f32 %v356_v50  ;;  %v355_v61 = vsub.f32 %v1073_v10, %v352_v60  ;;  %v225_v62 = vsel %vm69_vm2, %v886_v59, 0.0 }
 0x12e   :  { %809 = vmatprep.mubr.msk.bf16.mxu0 %vm69_vm2, %v100_v51  ;;  %226 = vadd.xlane.f32.xlu0 %v225_v62  ;;  %v483_v63 = vpop.xlane.xlu1 %482 }
 0x12f   :  { %v1134_v0 = vpop.eup %887  ;;  %v360_v1 = vmul.f32 1.442695, %v355_v61  ;;  %v490_v2 = vsub.f32 %v1081_v18, %v483_v63 }
 0x130   :  { %v486_v3 = vpop.xlane.xlu0 %485  ;;  %v101_v4 = vpack.c.bf16 %v1134_v0, %v1134_v0  ;;  %v890_v8 = vpop.eup %889  ;;  %v94_v43 = vsel %vm69_vm2, %v1134_v0, 0.0 }
 0x131   :  { %897 = vpow2.f32 %v360_v1  ;;  %v493_v6 = vmul.f32 1.442695, %v490_v2  ;;  %v491_v7 = vsub.f32 %v1076_v14, %v486_v3  ;;  %v238_v19 = vpack.c.bf16 %v890_v8, %v890_v8 }
 0x132   :  { %810 = vmatmul.mubr.msk.bf16.vlgmr.msra.gmra.mrb[0].mxu0 %vm69_vm2, %v101_v4  ;;  %v489_v9 = vpop.xlane.xlu1 %488  ;;  %v231_v34 = vsel %vm69_vm2, %v890_v8, 0.0  ;;  %v959_v8 = vmov 0.0|0.0  }
 0x133   :  { %v892_v10 = vpop.eup %891  ;;  %899 = vpow2.f32 %v493_v6  ;;  %v495_v11 = vmul.f32 1.442695, %v491_v7  ;;  %v492_v12 = vsub.f32 %v1088_v24, %v489_v9  ;;  %822 = vmatpush3.bf16.msra.mxu0 %v877_v31 }
 0x134   :  { %v228_v15 = vsel %vm69_vm2, %v892_v10, 0.0  ;;  %v237_v16 = vpack.c.bf16 %v892_v10, %v886_v59  ;;  %852 = vmatprep.subr.msk.bf16.mxu0 %vm120_vm13, %v878_v5  ;;  %v894_v18 = vpop.eup %893 }
 0x135   :  { %901 = vpow2.f32 %v495_v11  ;;  %v497_v14 = vmul.f32 1.442695, %v492_v12  ;;  %229 = vadd.xlane.f32.xlu1 %v228_v15  ;;  %v365_v24 = vsel %vm69_vm2, %v894_v18, 0.0 }
 0x136   :  { %817 = vmatprep.mubr.msk.bf16.mxu1 %vm69_vm2, %v237_v16 }
 0x137   :  { %v896_v21 = vpop.eup %895  ;;  %903 = vpow2.f32 %v497_v14  ;;  %818 = vmatmul.mubr.msk.bf16.vlgmr.msra.gmra.mrb[0].mxu1 %vm69_vm2, %v238_v19  ;;  %824 = vmatpush3.bf16.msra.mxu0 %v396_v17 }
 0x138   :  { %v362_v22 = vsel %vm69_vm2, %v896_v21, 0.0  ;;  %v374_v25 = vpack.c.bf16 %v894_v18, %v896_v21  ;;  %830 = vmatpush3.bf16.msra.mxu1 %v1114_v32  ;;  %846 = vmatprep.subr.bf16.mxu0 %v959_v8 }
 0x139   :  { %363 = vadd.xlane.f32.xlu0 %v362_v22  ;;  %366 = vadd.xlane.f32.xlu1 %v365_v24 }
 0x13a   :  { %825 = vmatprep.mubr.msk.bf16.mxu0 %vm69_vm2, %v374_v25  ;;  %853 = vmatprep.subr.msk.bf16.mxu1 %vm120_vm13, %v880_v20  ;;  %v962_v20 = vmov 0.0  }
 0x13b   :  { %v898_v27 = vpop.eup %897 }
 0x13c   :  { %v375_v26 = vpack.c.bf16 %v898_v27, %v898_v27  ;;  %832 = vmatpush3.bf16.msra.mxu1 %v533_v13  ;;  %v368_v37 = vsel %vm69_vm2, %v898_v27, 0.0 }
 0x13d   :  { %v900_v28 = vpop.eup %899 }
 0x13e   :  { %826 = vmatmul.mubr.msk.bf16.vlgmr.msra.gmra.mrb[4].mxu0 %vm69_vm2, %v375_v26  ;;  %v499_v29 = vsel %vm69_vm2, %v900_v28, 0.0 }
 0x13f   :  { %v902_v30 = vpop.eup %901  ;;  %500 = vadd.xlane.f32.xlu0 %v499_v29  ;;  %843 = vmatprep.mubr.msk.f32.mxu0 %vm961_vm14, %v962_v20 }
 0x140   :  { %v502_v31 = vsel %vm69_vm2, %v902_v30, 0.0  ;;  %v511_v32 = vpack.c.bf16 %v902_v30, %v900_v28 }
 0x141   :  { %v904_v33 = vpop.eup %903  ;;  %503 = vadd.xlane.f32.xlu1 %v502_v31 }
 0x142   :  { %833 = vmatprep.mubr.msk.bf16.mxu1 %vm69_vm2, %v511_v32  ;;  %v512_v36 = vpack.c.bf16 %v904_v33, %v904_v33  ;;  %v505_v40 = vsel %vm69_vm2, %v904_v33, 0.0 }
 0x143   :  { %232 = vadd.xlane.f32.xlu0 %v231_v34  ;;  %v776_v34 = vld [vmem:[%s1220_s4] ss:$0 sm:$0xff] }
 0x144   :  { %834 = vmatmul.mubr.msk.bf16.vlgmr.msra.gmra.mrb[4].mxu1 %vm69_vm2, %v512_v36  ;;  %vm648_vm2 = vcmask 523264  }
 0x145   :  { %369 = vadd.xlane.f32.xlu1 %v368_v37  ;;  %vm848_vm3 = vmpackc.low %vm648_vm2, %vm648_vm2 }
 0x147   :  { %506 = vadd.xlane.f32.xlu0 %v505_v40 }
 0x149   :  { %89 = vadd.xlane.f32.xlu1 %v88_v41 }
 0x14b   :  { %92 = vadd.xlane.f32.xlu0 %v91_v42 }
 0x14d   :  { %95 = vadd.xlane.f32.xlu1 %v94_v43 }
 0x1bb   :  { %v227_v44 = vpop.xlane.xlu0 %226 }
 0x1bc   :  { %905 = vrcp.f32 %v227_v44 }
 0x1c2   :  { %v230_v45 = vpop.xlane.xlu1 %229 }
 0x1c3   :  { %907 = vrcp.f32 %v230_v45 }
 0x1c6   :  { %v364_v46 = vpop.xlane.xlu0 %363  ;;  %v367_v48 = vpop.xlane.xlu1 %366 }
 0x1c7   :  { %909 = vrcp.f32 %v364_v46  ;;  %v906_v38 = vpop.eup %905 }
 0x1c8   :  { %911 = vrcp.f32 %v367_v48 }
 0x1cc   :  { %v501_v23 = vpop.xlane.xlu0 %500 }
 0x1cd   :  { %v908_v57 = vpop.eup %907  ;;  %913 = vrcp.f32 %v501_v23 }
 0x1ce   :  { %v504_v54 = vpop.xlane.xlu1 %503 }
 0x1cf   :  { %915 = vrcp.f32 %v504_v54 }
 0x1d0   :  { %v233_v58 = vpop.xlane.xlu0 %232 }
 0x1d1   :  { %v910_v61 = vpop.eup %909  ;;  %917 = vrcp.f32 %v233_v58  ;;  %v647_v58 = vld [vmem:[%s1221_s5] sm:$0x1] }
 0x1d2   :  { %v370_v60 = vpop.xlane.xlu1 %369  ;;  %v912_v2 = vpop.eup %911 }
 0x1d3   :  { %919 = vrcp.f32 %v370_v60 }
 0x1d4   :  { %v507_v63 = vpop.xlane.xlu0 %506 }
 0x1d5   :  { %921 = vrcp.f32 %v507_v63 }
 0x1d6   :  { %v90_v22 = vpop.xlane.xlu1 %89 }
 0x1d7   :  { %v914_v6 = vpop.eup %913  ;;  %923 = vrcp.f32 %v90_v22 }
 0x1d8   :  { %v93_v24 = vpop.xlane.xlu0 %92 }
 0x1d9   :  { %v916_v11 = vpop.eup %915  ;;  %925 = vrcp.f32 %v93_v24 }
 0x1da   :  { %v96_v25 = vpop.xlane.xlu1 %95 }
 0x1db   :  { %v918_v16 = vpop.eup %917  ;;  %927 = vrcp.f32 %v96_v25 }
 0x1dd   :  { %v920_v18 = vpop.eup %919 }
 0x1df   :  { %v922_v19 = vpop.eup %921 }
 0x1e1   :  { %v924_v26 = vpop.eup %923 }
 0x1e3   :  { %v926_v30 = vpop.eup %925 }
 0x1e5   :  { %v928_v42 = vpop.eup %927 }
 0x205   :  { %v1173_v47 = vpop.f32.mrb[0].mxu0 }
 0x206   :  { %v1175_v49 = vpop.f32.mrb[1].mxu0  ;;  %v174_v46 = vmul.f32 %v928_v42, %v1173_v47 }
 0x207   :  { %v812_v52 = vpop.f32.mrb[2].mxu0  ;;  %v172_v29 = vmul.f32 %v924_v26, %v1175_v49 }
 0x208   :  { %v1177_v53 = vpop.f32.mrb[3].mxu0 }
 0x209   :  { %v173_v32 = vmul.f32 %v926_v30, %v1177_v53 }
 0x20a   :  { %v819_v35 = vpop.f32.mrb[0].mxu1 }
 0x20b   :  { %v295_v55 = vpop.f32.mrb[1].mxu1  ;;  %v311_v17 = vmul.f32 %v918_v16, %v819_v35 }
 0x20c   :  { %v309_v56 = vmul.f32 %v906_v38, %v295_v55  ;;  %v820_v39 = vpop.f32.mrb[2].mxu1 }
 0x20d   :  { %v298_v50 = vpop.f32.mrb[3].mxu1 }
 0x20e   :  { %v310_v59 = vmul.f32 %v908_v57, %v298_v50  ;;  %589 = vrot.lane.b32.xlu0 %v309_v56, %s957_s1 }
 0x210   :  { %591 = vrot.lane.b32.xlu1 %v310_v59, %s957_s1 }
 0x211   :  { %v827_v51 = vpop.f32.mrb[4].mxu0 }
 0x212   :  { %v432_v62 = vpop.f32.mrb[5].mxu0  ;;  %v448_v14 = vmul.f32 %v920_v18, %v827_v51 }
 0x213   :  { %v446_v0 = vmul.f32 %v910_v61, %v432_v62  ;;  %v828_v1 = vpop.f32.mrb[6].mxu0 }
 0x214   :  { %v435_v3 = vpop.f32.mrb[7].mxu0 }
 0x215   :  { %v447_v4 = vmul.f32 %v912_v2, %v435_v3  ;;  %601 = vrot.lane.b32.xlu1 %v446_v0, %s958_s27 }
 0x217   :  { %603 = vrot.lane.b32.xlu0 %v447_v4, %s958_s27  ;;  %v835_v5 = vpop.f32.mrb[4].mxu1 }
 0x218   :  { %v569_v7 = vpop.f32.mrb[5].mxu1  ;;  %v585_v21 = vmul.f32 %v922_v19, %v835_v5 }
 0x219   :  { %v583_v9 = vmul.f32 %v914_v6, %v569_v7  ;;  %v836_v10 = vpop.f32.mrb[6].mxu1 }
 0x21a   :  { %v572_v12 = vpop.f32.mrb[7].mxu1 }
 0x21b   :  { %v584_v15 = vmul.f32 %v916_v11, %v572_v12  ;;  %613 = vrot.lane.b32.xlu1 %v583_v9, %s960_s28 }
 0x21d   :  { %615 = vrot.lane.b32.xlu0 %v584_v15, %s960_s28 }
 0x21f   :  { %593 = vrot.lane.b32.xlu1 %v311_v17, %s957_s1 }
 0x221   :  { %605 = vrot.lane.b32.xlu0 %v448_v14, %s958_s27 }
 0x223   :  { %617 = vrot.lane.b32.xlu1 %v585_v21, %s960_s28 }
 0x280   :  { %v590_v27 = vpop.permute.xlu0 %589 }
 0x281   :  { %v623_v33 = vsel %vm622_vm15, %v172_v29, %v590_v27 }
 0x282   :  { %v592_v13 = vpop.permute.xlu1 %591 }
 0x283   :  { %v624_v40 = vsel %vm622_vm15, %v173_v32, %v592_v13 }
 0x287   :  { %v602_v28 = vpop.permute.xlu1 %601 }
 0x288   :  { %v627_v36 = vsel %vm626_vm0, %v623_v33, %v602_v28 }
 0x289   :  { %v604_v31 = vpop.permute.xlu0 %603 }
 0x28a   :  { %v628_v43 = vsel %vm626_vm0, %v624_v40, %v604_v31 }
 0x28d   :  { %v614_v37 = vpop.permute.xlu1 %613 }
 0x28e   :  { %v631_v41 = vsel %vm630_vm1, %v627_v36, %v614_v37 }
 0x28f   :  { %v641_v44 = vadd.f32 %v776_v34, %v631_v41  ;;  %v616_v45 = vpop.permute.xlu0 %615 }
 0x290   :  { %v632_v48 = vsel %vm630_vm1, %v628_v43, %v616_v45 }
 0x291   :  { %v642_v49 = vadd.f32 %v776_v34, %v632_v48  ;;  %v594_v23 = vpop.permute.xlu1 %593  ;;  %v644_v53 = vmax.f32 %v641_v44, 0.0 }
 0x292   :  { %v625_v52 = vsel %vm622_vm15, %v174_v46, %v594_v23 }
 0x293   :  { %v645_v35 = vmax.f32 %v642_v49, 0.0  ;;  %v606_v38 = vpop.permute.xlu0 %605 }
 0x294   :  { %v629_v54 = vsel %vm626_vm0, %v625_v52, %v606_v38 }
 0x295   :  { %v847_v55 = vpack.c.bf16 %v645_v35, %v644_v53  ;;  %v618_v56 = vpop.permute.xlu1 %617 }
 0x296   :  { %v633_v39 = vsel %vm630_vm1, %v629_v54, %v618_v56 }
 0x297   :  { %849 = vmatpush3.bf16.xpose.msk.msra.mxu0 %vm848_vm3, %v847_v55  ;;  %v643_v47 = vadd.f32 %v776_v34, %v633_v39 }
 0x298   :  { %841 = vmatprep.subr.mxu0 %v962_v20 }
 0x299   :  { %v646_v57 = vmax.f32 %v643_v47, 0.0 }
 0x29f   :  { %842 = vmatpush3.xpose.msk.msra.mxu0 %vm648_vm2, %v646_v57 }
 0x2a2   :  { %844 = vmatmul.mubr.msk.f32.vlgmr.msra.gmra.mrb[8].mxu0 %vm648_vm2, %v647_v58 }
 0x375   :  { %v727_v50 = vpop.f32.mrb[8].mxu0 }
 0x376   :  { %732 = vst.msk [vmem:[#allocation2] sm:$0x1] %vm731_vm4, %v727_v50  ;;  %v845_v59 = vpop.f32.mrb[9].mxu0 }
 0x377   :  { %940 = shalt.err (!%p937_p4)
}
 0x378   :  { %s941_s5 = scalar_lea.hbm %s1222_s6, 16 }
 0x379   :  { %p942_p5 = scmp.ne.s32.totalorder %s1222_s6, %s941_s5  ;;  %p945_p6 = scmp.lt.u32.totalorder %s941_s5, %s1222_s6 }
 0x37b   :  { %p947_p7 = pnand %p945_p6, %p942_p5 }
 0x37d   :  { %950 = shalt.err (!%p947_p7)
}
 0x37e   :  { %742 = dma.vmem_to_hbm [thread:$0]  %s740_s9, 16, %s1222_s6, [#allocation3]  }
 0x37f   :  { %951 = dma.done.wait [#allocation3], 16  }
 0x380   :  { %952 = vsyncadd [#allocation3], 4294967280 }
 0x381   :  { %746 = vsyncpa [#allocation3], 1 }

</bundles_post_ra>
